<compile_context>
chip_gen: v7x
topology: tpu7x:2x2x1
jax: 0.10.0
libtpu: 0.0.40
codegen_flags: <defaults>
</compile_context>

<pallas_src>
import functools
import math

import jax
import jax.numpy as jnp
from jax import lax
from jax.experimental import pallas as pl
from jax.experimental.pallas import tpu as pltpu


# ----------------------------- math helpers (f32) -----------------------------

def _layernorm(x, g, b, eps=1e-5):
    mu = jnp.mean(x, axis=-1, keepdims=True)
    var = jnp.mean(jnp.square(x - mu), axis=-1, keepdims=True)
    return (x - mu) * lax.rsqrt(var + eps) * g + b


def _new_gelu(x):
    # minGPT NewGELU (tanh approximation) == GPT-2 GELU
    return 0.5 * x * (1.0 + jnp.tanh(
        math.sqrt(2.0 / math.pi) * (x + 0.044715 * x * x * x)))


# --------------------------- fused transformer blocks ---------------------------

def gpt_blocks_kernel(n_head,
                      x_ref,
                      wqkv_ref, wproj_ref, wfc_ref, wfc2_ref,
                      ln1g_ref, ln1b_ref, bqkv_ref, bproj_ref,
                      ln2g_ref, ln2b_ref, bfc_ref, bfc2_ref,
                      out_ref,
                      x_vmem, mask_vmem):
    layer = pl.program_id(0)
    n_layer = pl.num_programs(0)
    B, T, D = x_ref.shape
    BT = B * T
    H = n_head
    hd = D // H

    # ---- one-time init: load activations into resident VMEM, build causal bias ----
    @pl.when(layer == 0)
    def _():
        x_vmem[...] = x_ref[...].reshape(BT, D)
        causal = (lax.broadcasted_iota(jnp.int32, (T, T), 0) >=
                  lax.broadcasted_iota(jnp.int32, (T, T), 1))
        # finite large-negative bias (avoids exp(-inf - -inf) NaN corner cases)
        mask_vmem[...] = jnp.where(causal, 0.0, -1e30).astype(jnp.float32)

    x = x_vmem[...]                                  # (BT, D) f32 residual stream

    # per-layer params: streamed matrices (block l) + resident vectors (row l)
    wqkv, wproj = wqkv_ref[0], wproj_ref[0]          # (D,3D), (D,D)  bf16
    wfc, wfc2 = wfc_ref[0], wfc2_ref[0]              # (D,4D), (4D,D) bf16
    ln1g, ln1b = ln1g_ref[layer], ln1b_ref[layer]
    ln2g, ln2b = ln2g_ref[layer], ln2b_ref[layer]
    bqkv, bproj = bqkv_ref[layer], bproj_ref[layer]
    bfc, bfc2 = bfc_ref[layer], bfc2_ref[layer]

    # ---------------- causal multi-head self-attention (pre-LN) ----------------
    h1 = _layernorm(x, ln1g, ln1b)
    qkv = jnp.dot(h1.astype(jnp.bfloat16), wqkv,
                  preferred_element_type=jnp.float32) + bqkv       # (BT, 3D) f32
    q = qkv[:, 0 * D:1 * D].reshape(B, T, D)
    k = qkv[:, 1 * D:2 * D].reshape(B, T, D)
    v = qkv[:, 2 * D:3 * D].reshape(B, T, D)

    scale = jnp.float32(1.0 / math.sqrt(hd))
    bias = jnp.broadcast_to(mask_vmem[...], (B, T, T))             # hoisted once

    # Head re-combination folded into the output projection:
    #   concat_h(o_h) @ Wproj == sum_h o_h @ Wproj[h*hd:(h+1)*hd, :]
    y = jnp.zeros((BT, D), jnp.float32) + bproj
    for hh in range(H):
        sl = slice(hh * hd, (hh + 1) * hd)
        qh = q[:, :, sl].astype(jnp.bfloat16)                      # (B, T, hd)
        kh = k[:, :, sl].astype(jnp.bfloat16)
        vh = v[:, :, sl].astype(jnp.bfloat16)
        s = jnp.einsum('bqd,bkd->bqk', qh, kh,
                       preferred_element_type=jnp.float32) * scale + bias
        s = s - jnp.max(s, axis=-1, keepdims=True)
        p = jnp.exp(s)
        p = p * pl.reciprocal(jnp.sum(p, axis=-1, keepdims=True), approx=True)
        oh = jnp.einsum('bqk,bkd->bqd', p.astype(jnp.bfloat16), vh,
                        preferred_element_type=jnp.float32)        # (B, T, hd)
        y = y + jnp.dot(oh.reshape(BT, hd).astype(jnp.bfloat16), wproj[sl, :],
                        preferred_element_type=jnp.float32)
    x = x + y                                                      # attn residual

    # --------------------------- MLP (pre-LN, NewGELU) ---------------------------
    h2 = _layernorm(x, ln2g, ln2b)
    m = jnp.dot(h2.astype(jnp.bfloat16), wfc,
                preferred_element_type=jnp.float32) + bfc
    m = _new_gelu(m)
    m = jnp.dot(m.astype(jnp.bfloat16), wfc2,
                preferred_element_type=jnp.float32) + bfc2
    x = x + m                                                      # mlp residual

    x_vmem[...] = x

    @pl.when(layer == n_layer - 1)
    def _():
        out_ref[...] = x.reshape(B, T, D)


_STREAMED_KEYS = ('w_qkv', 'w_proj', 'w_fc', 'w_fc2')
_RESIDENT_KEYS = ('ln1_g', 'ln1_b', 'b_qkv', 'b_proj',
                  'ln2_g', 'ln2_b', 'b_fc', 'b_fc2')


def run_blocks(x, params, n_head):
    """x: (B, T, D) f32; per-layer weights stacked along axis 0."""
    B, T, D = x.shape
    streamed = [params[kk] for kk in _STREAMED_KEYS]
    resident = [params[kk] for kk in _RESIDENT_KEYS]
    n_layer = streamed[0].shape[0]

    def stream_spec(a):     # one layer's (K, N) matrix per grid step
        nd = a.ndim
        return pl.BlockSpec((1,) + a.shape[1:],
                            lambda l, _nd=nd: (l,) + (0,) * (_nd - 1))

    def resident_spec(a):   # small (n_layer, D') vectors: fully resident
        nd = a.ndim
        return pl.BlockSpec(a.shape, lambda l, _nd=nd: (0,) * _nd)

    in_specs = ([pl.BlockSpec((B, T, D), lambda l: (0, 0, 0))]
                + [stream_spec(w) for w in streamed]
                + [resident_spec(w) for w in resident])

    # TODO(synk): for production-size D (>=768) set vmem_limit_bytes and tile the
    # QKV / MLP weights over their K/N dims (v7x has only 64 MiB VMEM per core).
    return pl.pallas_call(
        functools.partial(gpt_blocks_kernel, n_head),
        out_shape=jax.ShapeDtypeStruct((B, T, D), jnp.float32),
        grid_spec=pltpu.PrefetchScalarGridSpec(
            num_scalar_prefetch=0,
            grid=(n_layer,),
            in_specs=in_specs,
            out_specs=pl.BlockSpec((B, T, D), lambda l: (0, 0, 0)),
            scratch_shapes=[pltpu.VMEM((B * T, D), jnp.float32),   # resident activations
                            pltpu.VMEM((T, T), jnp.float32)]),     # causal bias
        compiler_params=pltpu.CompilerParams(
            dimension_semantics=("arbitrary",)),
    )(x, *streamed, *resident)


# --------------------------- final LN + tiled lm_head ---------------------------

def lnf_head_kernel(x_ref, g_ref, b_ref, w_ref, out_ref, h_vmem):
    # x_ref: (1, T, D) f32; w_ref: (D, tV) bf16; out_ref: (1, T, tV) f32
    @pl.when(pl.program_id(1) == 0)
    def _():
        h = _layernorm(x_ref[0], g_ref[0], b_ref[0])
        h_vmem[...] = h.astype(jnp.bfloat16)
    out_ref[0] = jnp.dot(h_vmem[...], w_ref[...],
                         preferred_element_type=jnp.float32)


def run_lnf_head(x, g, b, wlm, *, tv=128):
    B, T, D = x.shape
    V = wlm.shape[1]
    if V % tv != 0:
        tv = V
    g2 = g.reshape(1, D)
    b2 = b.reshape(1, D)
    return pl.pallas_call(
        lnf_head_kernel,
        out_shape=jax.ShapeDtypeStruct((B, T, V), jnp.float32),
        grid_spec=pltpu.PrefetchScalarGridSpec(
            num_scalar_prefetch=0,
            grid=(B, V // tv),
            in_specs=[
                pl.BlockSpec((1, T, D), lambda bb, j: (bb, 0, 0)),
                pl.BlockSpec((1, D), lambda bb, j: (0, 0)),
                pl.BlockSpec((1, D), lambda bb, j: (0, 0)),
                pl.BlockSpec((D, tv), lambda bb, j: (0, j)),       # streamed vocab tile
            ],
            out_specs=pl.BlockSpec((1, T, tv), lambda bb, j: (bb, 0, j)),
            scratch_shapes=[pltpu.VMEM((T, D), jnp.bfloat16)]),    # ln_f(x) per batch row
        compiler_params=pltpu.CompilerParams(
            dimension_semantics=("parallel", "arbitrary")),
    )(x, g2, b2, wlm)


# ---------------------------------- parameters ----------------------------------

def init_params(key, vocab_size, cxt_size, embd_dim, n_layer):
    """Deterministic synthetic init mirroring GPT._init_weights.
    Linear weights stored as (in, out) [PyTorch (out,in) transposed] so every
    in-kernel matmul is lane-dense x @ W; matmul weights cast to bfloat16."""
    D = embd_dim
    std = 0.02
    proj_std = 0.02 / math.sqrt(2 * n_layer)                 # c_proj special init
    ks = jax.random.split(key, 3 + 4 * n_layer)

    wte = std * jax.random.normal(ks[0], (vocab_size, D), jnp.float32)
    wpe = std * jax.random.normal(ks[1], (cxt_size, D), jnp.float32)
    lm_w = std * jax.random.normal(ks[2], (D, vocab_size), jnp.float32)

    w_qkv, w_proj, w_fc, w_fc2 = [], [], [], []
    kidx = 3
    for _ in range(n_layer):
        w_qkv.append(std * jax.random.normal(ks[kidx], (D, 3 * D), jnp.float32)); kidx += 1
        w_proj.append(proj_std * jax.random.normal(ks[kidx], (D, D), jnp.float32)); kidx += 1
        w_fc.append(std * jax.random.normal(ks[kidx], (D, 4 * D), jnp.float32)); kidx += 1
        w_fc2.append(proj_std * jax.random.normal(ks[kidx], (4 * D, D), jnp.float32)); kidx += 1

    bf16 = jnp.bfloat16
    return dict(
        wte=wte, wpe=wpe,
        ln1_g=jnp.ones((n_layer, D), jnp.float32),
        ln1_b=jnp.zeros((n_layer, D), jnp.float32),
        w_qkv=jnp.stack(w_qkv).astype(bf16),
        b_qkv=jnp.zeros((n_layer, 3 * D), jnp.float32),
        w_proj=jnp.stack(w_proj).astype(bf16),
        b_proj=jnp.zeros((n_layer, D), jnp.float32),
        ln2_g=jnp.ones((n_layer, D), jnp.float32),
        ln2_b=jnp.zeros((n_layer, D), jnp.float32),
        w_fc=jnp.stack(w_fc).astype(bf16),
        b_fc=jnp.zeros((n_layer, 4 * D), jnp.float32),
        w_fc2=jnp.stack(w_fc2).astype(bf16),
        b_fc2=jnp.zeros((n_layer, D), jnp.float32),
        lnf_g=jnp.ones((D,), jnp.float32),
        lnf_b=jnp.zeros((D,), jnp.float32),
        lm_w=lm_w.astype(bf16),
    )


# ----------------------------------- forward -----------------------------------

def gpt_forward(idx, params, n_head):
    B, T = idx.shape
    tok_emb = jnp.take(params["wte"], idx, axis=0)           # (B, T, D)
    pos_emb = params["wpe"][:T][None, :, :]                  # (1, T, D)
    x = (tok_emb + pos_emb).astype(jnp.float32)              # embedding dropout = identity
    x = run_blocks(x, params, n_head)                        # all layers, one pallas_call
    logits = run_lnf_head(x, params["lnf_g"], params["lnf_b"], params["lm_w"])
    return logits


# ------------------------------------- main -------------------------------------

if __name__ == "__main__":
    # Small config consistent with the module (mini "gpt" variant).
    vocab_size = 256
    cxt_size = 16
    embd_dim = 128
    n_layer = 2
    n_head = 4
    B, T = 2, 8
    assert embd_dim % n_head == 0

    key = jax.random.PRNGKey(0)
    pkey, ikey = jax.random.split(key)
    params = init_params(pkey, vocab_size, cxt_size, embd_dim, n_layer)
    idx = jax.random.randint(ikey, (B, T), 0, vocab_size, dtype=jnp.int32)

    logits = jax.jit(functools.partial(gpt_forward, n_head=n_head))(idx, params)
    logits = jax.block_until_ready(logits)
    assert logits.shape == (B, T, vocab_size)
    assert bool(jnp.all(jnp.isfinite(logits)))
    print("KERNEL_OK")
</pallas_src>

<mosaic_0001>
module attributes {stable_mosaic.version = 11 : i64} {
  func.func @lnf_head_kernel(%arg0: i32, %arg1: i32, %arg2: memref<1x8x128xf32, #tpu.memory_space<vmem>>, %arg3: memref<1x128xf32, #tpu.memory_space<vmem>>, %arg4: memref<1x128xf32, #tpu.memory_space<vmem>>, %arg5: memref<128x128xbf16, #tpu.memory_space<vmem>>, %arg6: memref<1x8x128xf32, #tpu.memory_space<vmem>>, %arg7: memref<8x128xbf16, #tpu.memory_space<vmem>>) attributes {dimension_semantics = [#tpu.dimension_semantics<parallel>, #tpu.dimension_semantics<arbitrary>], iteration_bounds = array<i64: 2, 2>, scalar_prefetch = 0 : i64, scratch_operands = 1 : i64, tpu.core_type = #tpu.core_type<tc>, window_params = [{transform_indices = @transform_0, window_bounds = array<i64: 1, 8, 128>}, {pipeline_mode = #tpu.pipeline_mode<synchronous>, transform_indices = @transform_1, window_bounds = array<i64: 1, 128>}, {pipeline_mode = #tpu.pipeline_mode<synchronous>, transform_indices = @transform_2, window_bounds = array<i64: 1, 128>}, {transform_indices = @transform_3, window_bounds = array<i64: 128, 128>}, {transform_indices = @transform_4, window_bounds = array<i64: 1, 8, 128>}]} {
    %c0_i32 = arith.constant 0 : i32
    %0 = arith.cmpi eq, %arg1, %c0_i32 : i32
    %1 = arith.extui %0 : i1 to i32
    %c0_i32_0 = arith.constant 0 : i32
    %2 = arith.cmpi ne, %1, %c0_i32_0 : i32
    scf.if %2 {
      %c0_7 = arith.constant 0 : index
      %c0_8 = arith.constant 0 : index
      %c0_9 = arith.constant 0 : index
      %9 = vector.load %arg2[%c0_7, %c0_8, %c0_9] : memref<1x8x128xf32, #tpu.memory_space<vmem>>, vector<1x8x128xf32>
      %10 = vector.shape_cast %9 : vector<1x8x128xf32> to vector<8x128xf32>
      %c0_10 = arith.constant 0 : index
      %c0_11 = arith.constant 0 : index
      %11 = vector.load %arg3[%c0_10, %c0_11] : memref<1x128xf32, #tpu.memory_space<vmem>>, vector<1x128xf32>
      %12 = vector.shape_cast %11 : vector<1x128xf32> to vector<128xf32>
      %c0_12 = arith.constant 0 : index
      %c0_13 = arith.constant 0 : index
      %13 = vector.load %arg4[%c0_12, %c0_13] : memref<1x128xf32, #tpu.memory_space<vmem>>, vector<1x128xf32>
      %14 = vector.shape_cast %13 : vector<1x128xf32> to vector<128xf32>
      %cst_14 = arith.constant dense<0.000000e+00> : vector<8xf32>
      %15 = vector.multi_reduction <add>, %10, %cst_14 [1] : vector<8x128xf32> to vector<8xf32>
      %16 = vector.shape_cast %15 : vector<8xf32> to vector<8x1xf32>
      %cst_15 = arith.constant 1.280000e+02 : f32
      %17 = vector.broadcast %cst_15 : f32 to vector<8x1xf32>
      %18 = arith.divf %16, %17 : vector<8x1xf32>
      %19 = vector.broadcast %18 : vector<8x1xf32> to vector<8x128xf32>
      %20 = arith.subf %10, %19 : vector<8x128xf32>
      %21 = arith.mulf %20, %20 : vector<8x128xf32>
      %cst_16 = arith.constant dense<0.000000e+00> : vector<8xf32>
      %22 = vector.multi_reduction <add>, %21, %cst_16 [1] : vector<8x128xf32> to vector<8xf32>
      %23 = vector.shape_cast %22 : vector<8xf32> to vector<8x1xf32>
      %cst_17 = arith.constant 1.280000e+02 : f32
      %24 = vector.broadcast %cst_17 : f32 to vector<8x1xf32>
      %25 = arith.divf %23, %24 : vector<8x1xf32>
      %26 = vector.broadcast %18 : vector<8x1xf32> to vector<8x128xf32>
      %27 = arith.subf %10, %26 : vector<8x128xf32>
      %cst_18 = arith.constant 9.99999974E-6 : f32
      %28 = vector.broadcast %cst_18 : f32 to vector<8x1xf32>
      %29 = arith.addf %25, %28 : vector<8x1xf32>
      %30 = math.rsqrt %29 : vector<8x1xf32>
      %31 = vector.broadcast %30 : vector<8x1xf32> to vector<8x128xf32>
      %32 = arith.mulf %27, %31 : vector<8x128xf32>
      %33 = vector.shape_cast %12 : vector<128xf32> to vector<1x128xf32>
      %34 = vector.broadcast %33 : vector<1x128xf32> to vector<8x128xf32>
      %35 = arith.mulf %32, %34 : vector<8x128xf32>
      %36 = vector.shape_cast %14 : vector<128xf32> to vector<1x128xf32>
      %37 = vector.broadcast %36 : vector<1x128xf32> to vector<8x128xf32>
      %38 = arith.addf %35, %37 : vector<8x128xf32>
      %39 = arith.truncf %38 : vector<8x128xf32> to vector<8x128xbf16>
      %c0_19 = arith.constant 0 : index
      %c0_20 = arith.constant 0 : index
      %40 = vector.load %arg7[%c0_19, %c0_20] : memref<8x128xbf16, #tpu.memory_space<vmem>>, vector<8x128xbf16>
      tpu.vector_store %arg7[%c0_19, %c0_20], %39 {strides = array<i32>} : memref<8x128xbf16, #tpu.memory_space<vmem>>, vector<8x128xbf16>,
    } else {
    }
    %c0 = arith.constant 0 : index
    %c0_1 = arith.constant 0 : index
    %3 = vector.load %arg7[%c0, %c0_1] : memref<8x128xbf16, #tpu.memory_space<vmem>>, vector<8x128xbf16>
    %c0_2 = arith.constant 0 : index
    %c0_3 = arith.constant 0 : index
    %4 = vector.load %arg5[%c0_2, %c0_3] : memref<128x128xbf16, #tpu.memory_space<vmem>>, vector<128x128xbf16>
    %cst = arith.constant dense<0.000000e+00> : vector<8x128xf32>
    %5 = tpu.matmul %3, %4, %cst {dimension_numbers = #tpu.dot_dimension_numbers<[1], [0], [0], [1], [0, 0, 1, 1], [], []>} : vector<8x128xbf16>, vector<128x128xbf16>, vector<8x128xf32> -> vector<8x128xf32>
    %c0_4 = arith.constant 0 : index
    %c0_5 = arith.constant 0 : index
    %c0_6 = arith.constant 0 : index
    %6 = vector.load %arg6[%c0_4, %c0_5, %c0_6] : memref<1x8x128xf32, #tpu.memory_space<vmem>>, vector<1x8x128xf32>
    %7 = vector.shape_cast %6 : vector<1x8x128xf32> to vector<8x128xf32>
    %8 = vector.shape_cast %5 : vector<8x128xf32> to vector<1x8x128xf32>
    tpu.vector_store %arg6[%c0_4, %c0_5, %c0_6], %8 {strides = array<i32>} : memref<1x8x128xf32, #tpu.memory_space<vmem>>, vector<1x8x128xf32>,
    return
  }
  func.func @transform_0(%arg0: i32, %arg1: i32) -> (i32, i32, i32) {
    %c0_i32 = arith.constant 0 : i32
    %c0_i32_0 = arith.constant 0 : i32
    %c0_i32_1 = arith.constant 0 : i32
    return %arg0, %c0_i32, %c0_i32_0 : i32, i32, i32
  }
  func.func @transform_1(%arg0: i32, %arg1: i32) -> (i32, i32) {
    %c0_i32 = arith.constant 0 : i32
    %c0_i32_0 = arith.constant 0 : i32
    %c0_i32_1 = arith.constant 0 : i32
    return %c0_i32, %c0_i32_0 : i32, i32
  }
  func.func @transform_2(%arg0: i32, %arg1: i32) -> (i32, i32) {
    %c0_i32 = arith.constant 0 : i32
    %c0_i32_0 = arith.constant 0 : i32
    %c0_i32_1 = arith.constant 0 : i32
    return %c0_i32, %c0_i32_0 : i32, i32
  }
  func.func @transform_3(%arg0: i32, %arg1: i32) -> (i32, i32) {
    %c0_i32 = arith.constant 0 : i32
    %c0_i32_0 = arith.constant 0 : i32
    return %c0_i32, %arg1 : i32, i32
  }
  func.func @transform_4(%arg0: i32, %arg1: i32) -> (i32, i32, i32) {
    %c0_i32 = arith.constant 0 : i32
    %c0_i32_0 = arith.constant 0 : i32
    return %arg0, %c0_i32, %arg1 : i32, i32, i32
  }
}

module attributes {stable_mosaic.version = 11 : i64} {
  func.func @gpt_blocks_kernel(%arg0: i32, %arg1: memref<2x8x128xf32, #tpu.memory_space<vmem>>, %arg2: memref<1x128x384xbf16, #tpu.memory_space<vmem>>, %arg3: memref<1x128x128xbf16, #tpu.memory_space<vmem>>, %arg4: memref<1x128x512xbf16, #tpu.memory_space<vmem>>, %arg5: memref<1x512x128xbf16, #tpu.memory_space<vmem>>, %arg6: memref<2x128xf32, #tpu.memory_space<vmem>>, %arg7: memref<2x128xf32, #tpu.memory_space<vmem>>, %arg8: memref<2x384xf32, #tpu.memory_space<vmem>>, %arg9: memref<2x128xf32, #tpu.memory_space<vmem>>, %arg10: memref<2x128xf32, #tpu.memory_space<vmem>>, %arg11: memref<2x128xf32, #tpu.memory_space<vmem>>, %arg12: memref<2x512xf32, #tpu.memory_space<vmem>>, %arg13: memref<2x128xf32, #tpu.memory_space<vmem>>, %arg14: memref<2x8x128xf32, #tpu.memory_space<vmem>>, %arg15: memref<16x128xf32, #tpu.memory_space<vmem>>, %arg16: memref<8x8xf32, #tpu.memory_space<vmem>>) attributes {dimension_semantics = [#tpu.dimension_semantics<arbitrary>], iteration_bounds = array<i64: 2>, scalar_prefetch = 0 : i64, scratch_operands = 2 : i64, tpu.core_type = #tpu.core_type<tc>, window_params = [{pipeline_mode = #tpu.pipeline_mode<synchronous>, transform_indices = @transform_0, window_bounds = array<i64: 2, 8, 128>}, {transform_indices = @transform_1, window_bounds = array<i64: 1, 128, 384>}, {transform_indices = @transform_2, window_bounds = array<i64: 1, 128, 128>}, {transform_indices = @transform_3, window_bounds = array<i64: 1, 128, 512>}, {transform_indices = @transform_4, window_bounds = array<i64: 1, 512, 128>}, {pipeline_mode = #tpu.pipeline_mode<synchronous>, transform_indices = @transform_5, window_bounds = array<i64: 2, 128>}, {pipeline_mode = #tpu.pipeline_mode<synchronous>, transform_indices = @transform_6, window_bounds = array<i64: 2, 128>}, {pipeline_mode = #tpu.pipeline_mode<synchronous>, transform_indices = @transform_7, window_bounds = array<i64: 2, 384>}, {pipeline_mode = #tpu.pipeline_mode<synchronous>, transform_indices = @transform_8, window_bounds = array<i64: 2, 128>}, {pipeline_mode = #tpu.pipeline_mode<synchronous>, transform_indices = @transform_9, window_bounds = array<i64: 2, 128>}, {pipeline_mode = #tpu.pipeline_mode<synchronous>, transform_indices = @transform_10, window_bounds = array<i64: 2, 128>}, {pipeline_mode = #tpu.pipeline_mode<synchronous>, transform_indices = @transform_11, window_bounds = array<i64: 2, 512>}, {pipeline_mode = #tpu.pipeline_mode<synchronous>, transform_indices = @transform_12, window_bounds = array<i64: 2, 128>}, {pipeline_mode = #tpu.pipeline_mode<synchronous>, transform_indices = @transform_13, window_bounds = array<i64: 2, 8, 128>}]} {
    %c0_i32 = arith.constant 0 : i32
    %0 = arith.cmpi eq, %arg0, %c0_i32 : i32
    %1 = arith.extui %0 : i1 to i32
    %c0_i32_0 = arith.constant 0 : i32
    %2 = arith.cmpi ne, %1, %c0_i32_0 : i32
    scf.if %2 {
      %c0_68 = arith.constant 0 : index
      %c0_69 = arith.constant 0 : index
      %c0_70 = arith.constant 0 : index
      %239 = vector.load %arg1[%c0_68, %c0_69, %c0_70] : memref<2x8x128xf32, #tpu.memory_space<vmem>>, vector<2x8x128xf32>
      %240 = vector.shape_cast %239 : vector<2x8x128xf32> to vector<16x128xf32>
      %c0_71 = arith.constant 0 : index
      %c0_72 = arith.constant 0 : index
      %241 = vector.load %arg15[%c0_71, %c0_72] : memref<16x128xf32, #tpu.memory_space<vmem>>, vector<16x128xf32>
      tpu.vector_store %arg15[%c0_71, %c0_72], %240 {strides = array<i32>} : memref<16x128xf32, #tpu.memory_space<vmem>>, vector<16x128xf32>,
      %242 = tpu.iota {dimensions = array<i32: 0>} : vector<8x8xi32>
      %243 = tpu.iota {dimensions = array<i32: 1>} : vector<8x8xi32>
      %244 = arith.cmpi sge, %242, %243 : vector<8x8xi32>
      %cst_73 = arith.constant 0.000000e+00 : f32
      %cst_74 = arith.constant -1.000000e+30 : f32
      %245 = vector.broadcast %cst_73 : f32 to vector<8x8xf32>
      %246 = vector.broadcast %cst_74 : f32 to vector<8x8xf32>
      %247 = arith.select %244, %245, %246 : vector<8x8xi1>, vector<8x8xf32>
      %c0_75 = arith.constant 0 : index
      %c0_76 = arith.constant 0 : index
      %248 = vector.load %arg16[%c0_75, %c0_76] : memref<8x8xf32, #tpu.memory_space<vmem>>, vector<8x8xf32>
      tpu.vector_store %arg16[%c0_75, %c0_76], %247 {strides = array<i32>} : memref<8x8xf32, #tpu.memory_space<vmem>>, vector<8x8xf32>,
    } else {
    }
    %c0 = arith.constant 0 : index
    %c0_1 = arith.constant 0 : index
    %3 = vector.load %arg15[%c0, %c0_1] : memref<16x128xf32, #tpu.memory_space<vmem>>, vector<16x128xf32>
    %c0_2 = arith.constant 0 : index
    %c0_3 = arith.constant 0 : index
    %c0_4 = arith.constant 0 : index
    %4 = vector.load %arg2[%c0_2, %c0_3, %c0_4] : memref<1x128x384xbf16, #tpu.memory_space<vmem>>, vector<1x128x384xbf16>
    %5 = vector.shape_cast %4 : vector<1x128x384xbf16> to vector<128x384xbf16>
    %c0_5 = arith.constant 0 : index
    %c0_6 = arith.constant 0 : index
    %c0_7 = arith.constant 0 : index
    %6 = vector.load %arg3[%c0_5, %c0_6, %c0_7] : memref<1x128x128xbf16, #tpu.memory_space<vmem>>, vector<1x128x128xbf16>
    %7 = vector.shape_cast %6 : vector<1x128x128xbf16> to vector<128x128xbf16>
    %c0_8 = arith.constant 0 : index
    %c0_9 = arith.constant 0 : index
    %c0_10 = arith.constant 0 : index
    %8 = vector.load %arg4[%c0_8, %c0_9, %c0_10] : memref<1x128x512xbf16, #tpu.memory_space<vmem>>, vector<1x128x512xbf16>
    %9 = vector.shape_cast %8 : vector<1x128x512xbf16> to vector<128x512xbf16>
    %c0_11 = arith.constant 0 : index
    %c0_12 = arith.constant 0 : index
    %c0_13 = arith.constant 0 : index
    %10 = vector.load %arg5[%c0_11, %c0_12, %c0_13] : memref<1x512x128xbf16, #tpu.memory_space<vmem>>, vector<1x512x128xbf16>
    %11 = vector.shape_cast %10 : vector<1x512x128xbf16> to vector<512x128xbf16>
    %12 = arith.index_cast %arg0 : i32 to index
    %c0_14 = arith.constant 0 : index
    %13 = vector.load %arg6[%12, %c0_14] : memref<2x128xf32, #tpu.memory_space<vmem>>, vector<1x128xf32>
    %14 = vector.shape_cast %13 : vector<1x128xf32> to vector<128xf32>
    %15 = arith.index_cast %arg0 : i32 to index
    %c0_15 = arith.constant 0 : index
    %16 = vector.load %arg7[%15, %c0_15] : memref<2x128xf32, #tpu.memory_space<vmem>>, vector<1x128xf32>
    %17 = vector.shape_cast %16 : vector<1x128xf32> to vector<128xf32>
    %18 = arith.index_cast %arg0 : i32 to index
    %c0_16 = arith.constant 0 : index
    %19 = vector.load %arg10[%18, %c0_16] : memref<2x128xf32, #tpu.memory_space<vmem>>, vector<1x128xf32>
    %20 = vector.shape_cast %19 : vector<1x128xf32> to vector<128xf32>
    %21 = arith.index_cast %arg0 : i32 to index
    %c0_17 = arith.constant 0 : index
    %22 = vector.load %arg11[%21, %c0_17] : memref<2x128xf32, #tpu.memory_space<vmem>>, vector<1x128xf32>
    %23 = vector.shape_cast %22 : vector<1x128xf32> to vector<128xf32>
    %24 = arith.index_cast %arg0 : i32 to index
    %c0_18 = arith.constant 0 : index
    %25 = vector.load %arg8[%24, %c0_18] : memref<2x384xf32, #tpu.memory_space<vmem>>, vector<1x384xf32>
    %26 = vector.shape_cast %25 : vector<1x384xf32> to vector<384xf32>
    %27 = arith.index_cast %arg0 : i32 to index
    %c0_19 = arith.constant 0 : index
    %28 = vector.load %arg9[%27, %c0_19] : memref<2x128xf32, #tpu.memory_space<vmem>>, vector<1x128xf32>
    %29 = vector.shape_cast %28 : vector<1x128xf32> to vector<128xf32>
    %30 = arith.index_cast %arg0 : i32 to index
    %c0_20 = arith.constant 0 : index
    %31 = vector.load %arg12[%30, %c0_20] : memref<2x512xf32, #tpu.memory_space<vmem>>, vector<1x512xf32>
    %32 = vector.shape_cast %31 : vector<1x512xf32> to vector<512xf32>
    %33 = arith.index_cast %arg0 : i32 to index
    %c0_21 = arith.constant 0 : index
    %34 = vector.load %arg13[%33, %c0_21] : memref<2x128xf32, #tpu.memory_space<vmem>>, vector<1x128xf32>
    %35 = vector.shape_cast %34 : vector<1x128xf32> to vector<128xf32>
    %cst = arith.constant dense<0.000000e+00> : vector<16xf32>
    %36 = vector.multi_reduction <add>, %3, %cst [1] : vector<16x128xf32> to vector<16xf32>
    %37 = vector.shape_cast %36 : vector<16xf32> to vector<16x1xf32>
    %cst_22 = arith.constant 1.280000e+02 : f32
    %38 = vector.broadcast %cst_22 : f32 to vector<16x1xf32>
    %39 = arith.divf %37, %38 : vector<16x1xf32>
    %40 = vector.broadcast %39 : vector<16x1xf32> to vector<16x128xf32>
    %41 = arith.subf %3, %40 : vector<16x128xf32>
    %42 = arith.mulf %41, %41 : vector<16x128xf32>
    %cst_23 = arith.constant dense<0.000000e+00> : vector<16xf32>
    %43 = vector.multi_reduction <add>, %42, %cst_23 [1] : vector<16x128xf32> to vector<16xf32>
    %44 = vector.shape_cast %43 : vector<16xf32> to vector<16x1xf32>
    %cst_24 = arith.constant 1.280000e+02 : f32
    %45 = vector.broadcast %cst_24 : f32 to vector<16x1xf32>
    %46 = arith.divf %44, %45 : vector<16x1xf32>
    %47 = vector.broadcast %39 : vector<16x1xf32> to vector<16x128xf32>
    %48 = arith.subf %3, %47 : vector<16x128xf32>
    %cst_25 = arith.constant 9.99999974E-6 : f32
    %49 = vector.broadcast %cst_25 : f32 to vector<16x1xf32>
    %50 = arith.addf %46, %49 : vector<16x1xf32>
    %51 = math.rsqrt %50 : vector<16x1xf32>
    %52 = vector.broadcast %51 : vector<16x1xf32> to vector<16x128xf32>
    %53 = arith.mulf %48, %52 : vector<16x128xf32>
    %54 = vector.shape_cast %14 : vector<128xf32> to vector<1x128xf32>
    %55 = vector.broadcast %54 : vector<1x128xf32> to vector<16x128xf32>
    %56 = arith.mulf %53, %55 : vector<16x128xf32>
    %57 = vector.shape_cast %17 : vector<128xf32> to vector<1x128xf32>
    %58 = vector.broadcast %57 : vector<1x128xf32> to vector<16x128xf32>
    %59 = arith.addf %56, %58 : vector<16x128xf32>
    %60 = arith.truncf %59 : vector<16x128xf32> to vector<16x128xbf16>
    %cst_26 = arith.constant dense<0.000000e+00> : vector<16x384xf32>
    %61 = tpu.matmul %60, %5, %cst_26 {dimension_numbers = #tpu.dot_dimension_numbers<[1], [0], [0], [1], [0, 0, 1, 1], [], []>} : vector<16x128xbf16>, vector<128x384xbf16>, vector<16x384xf32> -> vector<16x384xf32>
    %62 = vector.shape_cast %26 : vector<384xf32> to vector<1x384xf32>
    %63 = vector.broadcast %62 : vector<1x384xf32> to vector<16x384xf32>
    %64 = arith.addf %61, %63 : vector<16x384xf32>
    %65 = vector.extract_strided_slice %64 {offsets = [0, 0], sizes = [16, 128], strides = [1, 1]} : vector<16x384xf32> to vector<16x128xf32>
    %66 = vector.shape_cast %65 : vector<16x128xf32> to vector<2x8x128xf32>
    %67 = vector.extract_strided_slice %64 {offsets = [0, 128], sizes = [16, 128], strides = [1, 1]} : vector<16x384xf32> to vector<16x128xf32>
    %68 = vector.shape_cast %67 : vector<16x128xf32> to vector<2x8x128xf32>
    %69 = vector.extract_strided_slice %64 {offsets = [0, 256], sizes = [16, 128], strides = [1, 1]} : vector<16x384xf32> to vector<16x128xf32>
    %70 = vector.shape_cast %69 : vector<16x128xf32> to vector<2x8x128xf32>
    %c0_27 = arith.constant 0 : index
    %c0_28 = arith.constant 0 : index
    %71 = vector.load %arg16[%c0_27, %c0_28] : memref<8x8xf32, #tpu.memory_space<vmem>>, vector<8x8xf32>
    %72 = vector.shape_cast %71 : vector<8x8xf32> to vector<1x8x8xf32>
    %73 = vector.broadcast %72 : vector<1x8x8xf32> to vector<2x8x8xf32>
    %cst_29 = arith.constant 0.000000e+00 : f32
    %74 = vector.broadcast %cst_29 : f32 to vector<16x128xf32>
    %75 = vector.shape_cast %29 : vector<128xf32> to vector<1x128xf32>
    %76 = vector.broadcast %75 : vector<1x128xf32> to vector<16x128xf32>
    %77 = arith.addf %74, %76 : vector<16x128xf32>
    %78 = vector.extract_strided_slice %66 {offsets = [0, 0, 0], sizes = [2, 8, 32], strides = [1, 1, 1]} : vector<2x8x128xf32> to vector<2x8x32xf32>
    %79 = arith.truncf %78 : vector<2x8x32xf32> to vector<2x8x32xbf16>
    %80 = vector.extract_strided_slice %68 {offsets = [0, 0, 0], sizes = [2, 8, 32], strides = [1, 1, 1]} : vector<2x8x128xf32> to vector<2x8x32xf32>
    %81 = arith.truncf %80 : vector<2x8x32xf32> to vector<2x8x32xbf16>
    %82 = vector.extract_strided_slice %70 {offsets = [0, 0, 0], sizes = [2, 8, 32], strides = [1, 1, 1]} : vector<2x8x128xf32> to vector<2x8x32xf32>
    %83 = arith.truncf %82 : vector<2x8x32xf32> to vector<2x8x32xbf16>
    "tpu.trace_start"() <{level = 10 : i32, message = "bqd,bkd->bqk"}> : () -> ()
    %cst_30 = arith.constant dense<0.000000e+00> : vector<2x8x8xf32>
    %84 = tpu.matmul %79, %81, %cst_30 {dimension_numbers = #tpu.dot_dimension_numbers<[2], [2], [1], [1], [0, 0, 0, 1, 1, 1], [0], [0]>} : vector<2x8x32xbf16>, vector<2x8x32xbf16>, vector<2x8x8xf32> -> vector<2x8x8xf32>
    "tpu.trace_stop"() : () -> ()
    %cst_31 = arith.constant 0.176776692 : f32
    %85 = vector.broadcast %cst_31 : f32 to vector<2x8x8xf32>
    %86 = arith.mulf %84, %85 : vector<2x8x8xf32>
    %87 = arith.addf %86, %73 : vector<2x8x8xf32>
    %cst_32 = arith.constant dense<0xFF800000> : vector<2x8xf32>
    %88 = vector.multi_reduction <maximumf>, %87, %cst_32 [2] : vector<2x8x8xf32> to vector<2x8xf32>
    %89 = vector.shape_cast %88 : vector<2x8xf32> to vector<2x8x1xf32>
    %90 = vector.broadcast %89 : vector<2x8x1xf32> to vector<2x8x8xf32>
    %91 = arith.subf %87, %90 : vector<2x8x8xf32>
    %92 = math.exp %91 : vector<2x8x8xf32>
    %cst_33 = arith.constant dense<0.000000e+00> : vector<2x8xf32>
    %93 = vector.multi_reduction <add>, %92, %cst_33 [2] : vector<2x8x8xf32> to vector<2x8xf32>
    %94 = vector.shape_cast %93 : vector<2x8xf32> to vector<2x8x1xf32>
    %95 = tpu.reciprocal %94 {approx = true} : vector<2x8x1xf32> -> vector<2x8x1xf32>
    %96 = vector.broadcast %95 : vector<2x8x1xf32> to vector<2x8x8xf32>
    %97 = arith.mulf %92, %96 : vector<2x8x8xf32>
    %98 = arith.truncf %97 : vector<2x8x8xf32> to vector<2x8x8xbf16>
    "tpu.trace_start"() <{level = 10 : i32, message = "bqk,bkd->bqd"}> : () -> ()
    %cst_34 = arith.constant dense<0.000000e+00> : vector<2x8x32xf32>
    %99 = tpu.matmul %98, %83, %cst_34 {dimension_numbers = #tpu.dot_dimension_numbers<[2], [1], [1], [2], [0, 0, 0, 1, 1, 2], [0], [0]>} : vector<2x8x8xbf16>, vector<2x8x32xbf16>, vector<2x8x32xf32> -> vector<2x8x32xf32>
    "tpu.trace_stop"() : () -> ()
    %100 = vector.shape_cast %99 : vector<2x8x32xf32> to vector<16x32xf32>
    %101 = arith.truncf %100 : vector<16x32xf32> to vector<16x32xbf16>
    %102 = vector.extract_strided_slice %7 {offsets = [0, 0], sizes = [32, 128], strides = [1, 1]} : vector<128x128xbf16> to vector<32x128xbf16>
    %cst_35 = arith.constant dense<0.000000e+00> : vector<16x128xf32>
    %103 = tpu.matmul %101, %102, %cst_35 {dimension_numbers = #tpu.dot_dimension_numbers<[1], [0], [0], [1], [0, 0, 1, 1], [], []>} : vector<16x32xbf16>, vector<32x128xbf16>, vector<16x128xf32> -> vector<16x128xf32>
    %104 = arith.addf %77, %103 : vector<16x128xf32>
    %105 = vector.extract_strided_slice %66 {offsets = [0, 0, 32], sizes = [2, 8, 32], strides = [1, 1, 1]} : vector<2x8x128xf32> to vector<2x8x32xf32>
    %106 = arith.truncf %105 : vector<2x8x32xf32> to vector<2x8x32xbf16>
    %107 = vector.extract_strided_slice %68 {offsets = [0, 0, 32], sizes = [2, 8, 32], strides = [1, 1, 1]} : vector<2x8x128xf32> to vector<2x8x32xf32>
    %108 = arith.truncf %107 : vector<2x8x32xf32> to vector<2x8x32xbf16>
    %109 = vector.extract_strided_slice %70 {offsets = [0, 0, 32], sizes = [2, 8, 32], strides = [1, 1, 1]} : vector<2x8x128xf32> to vector<2x8x32xf32>
    %110 = arith.truncf %109 : vector<2x8x32xf32> to vector<2x8x32xbf16>
    "tpu.trace_start"() <{level = 10 : i32, message = "bqd,bkd->bqk"}> : () -> ()
    %cst_36 = arith.constant dense<0.000000e+00> : vector<2x8x8xf32>
    %111 = tpu.matmul %106, %108, %cst_36 {dimension_numbers = #tpu.dot_dimension_numbers<[2], [2], [1], [1], [0, 0, 0, 1, 1, 1], [0], [0]>} : vector<2x8x32xbf16>, vector<2x8x32xbf16>, vector<2x8x8xf32> -> vector<2x8x8xf32>
    "tpu.trace_stop"() : () -> ()
    %cst_37 = arith.constant 0.176776692 : f32
    %112 = vector.broadcast %cst_37 : f32 to vector<2x8x8xf32>
    %113 = arith.mulf %111, %112 : vector<2x8x8xf32>
    %114 = arith.addf %113, %73 : vector<2x8x8xf32>
    %cst_38 = arith.constant dense<0xFF800000> : vector<2x8xf32>
    %115 = vector.multi_reduction <maximumf>, %114, %cst_38 [2] : vector<2x8x8xf32> to vector<2x8xf32>
    %116 = vector.shape_cast %115 : vector<2x8xf32> to vector<2x8x1xf32>
    %117 = vector.broadcast %116 : vector<2x8x1xf32> to vector<2x8x8xf32>
    %118 = arith.subf %114, %117 : vector<2x8x8xf32>
    %119 = math.exp %118 : vector<2x8x8xf32>
    %cst_39 = arith.constant dense<0.000000e+00> : vector<2x8xf32>
    %120 = vector.multi_reduction <add>, %119, %cst_39 [2] : vector<2x8x8xf32> to vector<2x8xf32>
    %121 = vector.shape_cast %120 : vector<2x8xf32> to vector<2x8x1xf32>
    %122 = tpu.reciprocal %121 {approx = true} : vector<2x8x1xf32> -> vector<2x8x1xf32>
    %123 = vector.broadcast %122 : vector<2x8x1xf32> to vector<2x8x8xf32>
    %124 = arith.mulf %119, %123 : vector<2x8x8xf32>
    %125 = arith.truncf %124 : vector<2x8x8xf32> to vector<2x8x8xbf16>
    "tpu.trace_start"() <{level = 10 : i32, message = "bqk,bkd->bqd"}> : () -> ()
    %cst_40 = arith.constant dense<0.000000e+00> : vector<2x8x32xf32>
    %126 = tpu.matmul %125, %110, %cst_40 {dimension_numbers = #tpu.dot_dimension_numbers<[2], [1], [1], [2], [0, 0, 0, 1, 1, 2], [0], [0]>} : vector<2x8x8xbf16>, vector<2x8x32xbf16>, vector<2x8x32xf32> -> vector<2x8x32xf32>
    "tpu.trace_stop"() : () -> ()
    %127 = vector.shape_cast %126 : vector<2x8x32xf32> to vector<16x32xf32>
    %128 = arith.truncf %127 : vector<16x32xf32> to vector<16x32xbf16>
    %129 = vector.extract_strided_slice %7 {offsets = [32, 0], sizes = [32, 128], strides = [1, 1]} : vector<128x128xbf16> to vector<32x128xbf16>
    %cst_41 = arith.constant dense<0.000000e+00> : vector<16x128xf32>
    %130 = tpu.matmul %128, %129, %cst_41 {dimension_numbers = #tpu.dot_dimension_numbers<[1], [0], [0], [1], [0, 0, 1, 1], [], []>} : vector<16x32xbf16>, vector<32x128xbf16>, vector<16x128xf32> -> vector<16x128xf32>
    %131 = arith.addf %104, %130 : vector<16x128xf32>
    %132 = vector.extract_strided_slice %66 {offsets = [0, 0, 64], sizes = [2, 8, 32], strides = [1, 1, 1]} : vector<2x8x128xf32> to vector<2x8x32xf32>
    %133 = arith.truncf %132 : vector<2x8x32xf32> to vector<2x8x32xbf16>
    %134 = vector.extract_strided_slice %68 {offsets = [0, 0, 64], sizes = [2, 8, 32], strides = [1, 1, 1]} : vector<2x8x128xf32> to vector<2x8x32xf32>
    %135 = arith.truncf %134 : vector<2x8x32xf32> to vector<2x8x32xbf16>
    %136 = vector.extract_strided_slice %70 {offsets = [0, 0, 64], sizes = [2, 8, 32], strides = [1, 1, 1]} : vector<2x8x128xf32> to vector<2x8x32xf32>
    %137 = arith.truncf %136 : vector<2x8x32xf32> to vector<2x8x32xbf16>
    "tpu.trace_start"() <{level = 10 : i32, message = "bqd,bkd->bqk"}> : () -> ()
    %cst_42 = arith.constant dense<0.000000e+00> : vector<2x8x8xf32>
    %138 = tpu.matmul %133, %135, %cst_42 {dimension_numbers = #tpu.dot_dimension_numbers<[2], [2], [1], [1], [0, 0, 0, 1, 1, 1], [0], [0]>} : vector<2x8x32xbf16>, vector<2x8x32xbf16>, vector<2x8x8xf32> -> vector<2x8x8xf32>
    "tpu.trace_stop"() : () -> ()
    %cst_43 = arith.constant 0.176776692 : f32
    %139 = vector.broadcast %cst_43 : f32 to vector<2x8x8xf32>
    %140 = arith.mulf %138, %139 : vector<2x8x8xf32>
    %141 = arith.addf %140, %73 : vector<2x8x8xf32>
    %cst_44 = arith.constant dense<0xFF800000> : vector<2x8xf32>
    %142 = vector.multi_reduction <maximumf>, %141, %cst_44 [2] : vector<2x8x8xf32> to vector<2x8xf32>
    %143 = vector.shape_cast %142 : vector<2x8xf32> to vector<2x8x1xf32>
    %144 = vector.broadcast %143 : vector<2x8x1xf32> to vector<2x8x8xf32>
    %145 = arith.subf %141, %144 : vector<2x8x8xf32>
    %146 = math.exp %145 : vector<2x8x8xf32>
    %cst_45 = arith.constant dense<0.000000e+00> : vector<2x8xf32>
    %147 = vector.multi_reduction <add>, %146, %cst_45 [2] : vector<2x8x8xf32> to vector<2x8xf32>
    %148 = vector.shape_cast %147 : vector<2x8xf32> to vector<2x8x1xf32>
    %149 = tpu.reciprocal %148 {approx = true} : vector<2x8x1xf32> -> vector<2x8x1xf32>
    %150 = vector.broadcast %149 : vector<2x8x1xf32> to vector<2x8x8xf32>
    %151 = arith.mulf %146, %150 : vector<2x8x8xf32>
    %152 = arith.truncf %151 : vector<2x8x8xf32> to vector<2x8x8xbf16>
    "tpu.trace_start"() <{level = 10 : i32, message = "bqk,bkd->bqd"}> : () -> ()
    %cst_46 = arith.constant dense<0.000000e+00> : vector<2x8x32xf32>
    %153 = tpu.matmul %152, %137, %cst_46 {dimension_numbers = #tpu.dot_dimension_numbers<[2], [1], [1], [2], [0, 0, 0, 1, 1, 2], [0], [0]>} : vector<2x8x8xbf16>, vector<2x8x32xbf16>, vector<2x8x32xf32> -> vector<2x8x32xf32>
    "tpu.trace_stop"() : () -> ()
    %154 = vector.shape_cast %153 : vector<2x8x32xf32> to vector<16x32xf32>
    %155 = arith.truncf %154 : vector<16x32xf32> to vector<16x32xbf16>
    %156 = vector.extract_strided_slice %7 {offsets = [64, 0], sizes = [32, 128], strides = [1, 1]} : vector<128x128xbf16> to vector<32x128xbf16>
    %cst_47 = arith.constant dense<0.000000e+00> : vector<16x128xf32>
    %157 = tpu.matmul %155, %156, %cst_47 {dimension_numbers = #tpu.dot_dimension_numbers<[1], [0], [0], [1], [0, 0, 1, 1], [], []>} : vector<16x32xbf16>, vector<32x128xbf16>, vector<16x128xf32> -> vector<16x128xf32>
    %158 = arith.addf %131, %157 : vector<16x128xf32>
    %159 = vector.extract_strided_slice %66 {offsets = [0, 0, 96], sizes = [2, 8, 32], strides = [1, 1, 1]} : vector<2x8x128xf32> to vector<2x8x32xf32>
    %160 = arith.truncf %159 : vector<2x8x32xf32> to vector<2x8x32xbf16>
    %161 = vector.extract_strided_slice %68 {offsets = [0, 0, 96], sizes = [2, 8, 32], strides = [1, 1, 1]} : vector<2x8x128xf32> to vector<2x8x32xf32>
    %162 = arith.truncf %161 : vector<2x8x32xf32> to vector<2x8x32xbf16>
    %163 = vector.extract_strided_slice %70 {offsets = [0, 0, 96], sizes = [2, 8, 32], strides = [1, 1, 1]} : vector<2x8x128xf32> to vector<2x8x32xf32>
    %164 = arith.truncf %163 : vector<2x8x32xf32> to vector<2x8x32xbf16>
    "tpu.trace_start"() <{level = 10 : i32, message = "bqd,bkd->bqk"}> : () -> ()
    %cst_48 = arith.constant dense<0.000000e+00> : vector<2x8x8xf32>
    %165 = tpu.matmul %160, %162, %cst_48 {dimension_numbers = #tpu.dot_dimension_numbers<[2], [2], [1], [1], [0, 0, 0, 1, 1, 1], [0], [0]>} : vector<2x8x32xbf16>, vector<2x8x32xbf16>, vector<2x8x8xf32> -> vector<2x8x8xf32>
    "tpu.trace_stop"() : () -> ()
    %cst_49 = arith.constant 0.176776692 : f32
    %166 = vector.broadcast %cst_49 : f32 to vector<2x8x8xf32>
    %167 = arith.mulf %165, %166 : vector<2x8x8xf32>
    %168 = arith.addf %167, %73 : vector<2x8x8xf32>
    %cst_50 = arith.constant dense<0xFF800000> : vector<2x8xf32>
    %169 = vector.multi_reduction <maximumf>, %168, %cst_50 [2] : vector<2x8x8xf32> to vector<2x8xf32>
    %170 = vector.shape_cast %169 : vector<2x8xf32> to vector<2x8x1xf32>
    %171 = vector.broadcast %170 : vector<2x8x1xf32> to vector<2x8x8xf32>
    %172 = arith.subf %168, %171 : vector<2x8x8xf32>
    %173 = math.exp %172 : vector<2x8x8xf32>
    %cst_51 = arith.constant dense<0.000000e+00> : vector<2x8xf32>
    %174 = vector.multi_reduction <add>, %173, %cst_51 [2] : vector<2x8x8xf32> to vector<2x8xf32>
    %175 = vector.shape_cast %174 : vector<2x8xf32> to vector<2x8x1xf32>
    %176 = tpu.reciprocal %175 {approx = true} : vector<2x8x1xf32> -> vector<2x8x1xf32>
    %177 = vector.broadcast %176 : vector<2x8x1xf32> to vector<2x8x8xf32>
    %178 = arith.mulf %173, %177 : vector<2x8x8xf32>
    %179 = arith.truncf %178 : vector<2x8x8xf32> to vector<2x8x8xbf16>
    "tpu.trace_start"() <{level = 10 : i32, message = "bqk,bkd->bqd"}> : () -> ()
    %cst_52 = arith.constant dense<0.000000e+00> : vector<2x8x32xf32>
    %180 = tpu.matmul %179, %164, %cst_52 {dimension_numbers = #tpu.dot_dimension_numbers<[2], [1], [1], [2], [0, 0, 0, 1, 1, 2], [0], [0]>} : vector<2x8x8xbf16>, vector<2x8x32xbf16>, vector<2x8x32xf32> -> vector<2x8x32xf32>
    "tpu.trace_stop"() : () -> ()
    %181 = vector.shape_cast %180 : vector<2x8x32xf32> to vector<16x32xf32>
    %182 = arith.truncf %181 : vector<16x32xf32> to vector<16x32xbf16>
    %183 = vector.extract_strided_slice %7 {offsets = [96, 0], sizes = [32, 128], strides = [1, 1]} : vector<128x128xbf16> to vector<32x128xbf16>
    %cst_53 = arith.constant dense<0.000000e+00> : vector<16x128xf32>
    %184 = tpu.matmul %182, %183, %cst_53 {dimension_numbers = #tpu.dot_dimension_numbers<[1], [0], [0], [1], [0, 0, 1, 1], [], []>} : vector<16x32xbf16>, vector<32x128xbf16>, vector<16x128xf32> -> vector<16x128xf32>
    %185 = arith.addf %158, %184 : vector<16x128xf32>
    %186 = arith.addf %3, %185 : vector<16x128xf32>
    %cst_54 = arith.constant dense<0.000000e+00> : vector<16xf32>
    %187 = vector.multi_reduction <add>, %186, %cst_54 [1] : vector<16x128xf32> to vector<16xf32>
    %188 = vector.shape_cast %187 : vector<16xf32> to vector<16x1xf32>
    %cst_55 = arith.constant 1.280000e+02 : f32
    %189 = vector.broadcast %cst_55 : f32 to vector<16x1xf32>
    %190 = arith.divf %188, %189 : vector<16x1xf32>
    %191 = vector.broadcast %190 : vector<16x1xf32> to vector<16x128xf32>
    %192 = arith.subf %186, %191 : vector<16x128xf32>
    %193 = arith.mulf %192, %192 : vector<16x128xf32>
    %cst_56 = arith.constant dense<0.000000e+00> : vector<16xf32>
    %194 = vector.multi_reduction <add>, %193, %cst_56 [1] : vector<16x128xf32> to vector<16xf32>
    %195 = vector.shape_cast %194 : vector<16xf32> to vector<16x1xf32>
    %cst_57 = arith.constant 1.280000e+02 : f32
    %196 = vector.broadcast %cst_57 : f32 to vector<16x1xf32>
    %197 = arith.divf %195, %196 : vector<16x1xf32>
    %198 = vector.broadcast %190 : vector<16x1xf32> to vector<16x128xf32>
    %199 = arith.subf %186, %198 : vector<16x128xf32>
    %cst_58 = arith.constant 9.99999974E-6 : f32
    %200 = vector.broadcast %cst_58 : f32 to vector<16x1xf32>
    %201 = arith.addf %197, %200 : vector<16x1xf32>
    %202 = math.rsqrt %201 : vector<16x1xf32>
    %203 = vector.broadcast %202 : vector<16x1xf32> to vector<16x128xf32>
    %204 = arith.mulf %199, %203 : vector<16x128xf32>
    %205 = vector.shape_cast %20 : vector<128xf32> to vector<1x128xf32>
    %206 = vector.broadcast %205 : vector<1x128xf32> to vector<16x128xf32>
    %207 = arith.mulf %204, %206 : vector<16x128xf32>
    %208 = vector.shape_cast %23 : vector<128xf32> to vector<1x128xf32>
    %209 = vector.broadcast %208 : vector<1x128xf32> to vector<16x128xf32>
    %210 = arith.addf %207, %209 : vector<16x128xf32>
    %211 = arith.truncf %210 : vector<16x128xf32> to vector<16x128xbf16>
    %cst_59 = arith.constant dense<0.000000e+00> : vector<16x512xf32>
    %212 = tpu.matmul %211, %9, %cst_59 {dimension_numbers = #tpu.dot_dimension_numbers<[1], [0], [0], [1], [0, 0, 1, 1], [], []>} : vector<16x128xbf16>, vector<128x512xbf16>, vector<16x512xf32> -> vector<16x512xf32>
    %213 = vector.shape_cast %32 : vector<512xf32> to vector<1x512xf32>
    %214 = vector.broadcast %213 : vector<1x512xf32> to vector<16x512xf32>
    %215 = arith.addf %212, %214 : vector<16x512xf32>
    %cst_60 = arith.constant 5.000000e-01 : f32
    %216 = vector.broadcast %cst_60 : f32 to vector<16x512xf32>
    %217 = arith.mulf %216, %215 : vector<16x512xf32>
    %cst_61 = arith.constant 4.471500e-02 : f32
    %218 = vector.broadcast %cst_61 : f32 to vector<16x512xf32>
    %219 = arith.mulf %218, %215 : vector<16x512xf32>
    %220 = arith.mulf %219, %215 : vector<16x512xf32>
    %221 = arith.mulf %220, %215 : vector<16x512xf32>
    %222 = arith.addf %215, %221 : vector<16x512xf32>
    %cst_62 = arith.constant 0.797884583 : f32
    %223 = vector.broadcast %cst_62 : f32 to vector<16x512xf32>
    %224 = arith.mulf %223, %222 : vector<16x512xf32>
    %225 = math.tanh %224 : vector<16x512xf32>
    %cst_63 = arith.constant 1.000000e+00 : f32
    %226 = vector.broadcast %cst_63 : f32 to vector<16x512xf32>
    %227 = arith.addf %226, %225 : vector<16x512xf32>
    %228 = arith.mulf %217, %227 : vector<16x512xf32>
    %229 = arith.truncf %228 : vector<16x512xf32> to vector<16x512xbf16>
    %cst_64 = arith.constant dense<0.000000e+00> : vector<16x128xf32>
    %230 = tpu.matmul %229, %11, %cst_64 {dimension_numbers = #tpu.dot_dimension_numbers<[1], [0], [0], [1], [0, 0, 1, 1], [], []>} : vector<16x512xbf16>, vector<512x128xbf16>, vector<16x128xf32> -> vector<16x128xf32>
    %231 = vector.shape_cast %35 : vector<128xf32> to vector<1x128xf32>
    %232 = vector.broadcast %231 : vector<1x128xf32> to vector<16x128xf32>
    %233 = arith.addf %230, %232 : vector<16x128xf32>
    %234 = arith.addf %186, %233 : vector<16x128xf32>
    %c0_65 = arith.constant 0 : index
    %c0_66 = arith.constant 0 : index
    %235 = vector.load %arg15[%c0_65, %c0_66] : memref<16x128xf32, #tpu.memory_space<vmem>>, vector<16x128xf32>
    tpu.vector_store %arg15[%c0_65, %c0_66], %234 {strides = array<i32>} : memref<16x128xf32, #tpu.memory_space<vmem>>, vector<16x128xf32>,
    %c1_i32 = arith.constant 1 : i32
    %236 = arith.cmpi eq, %arg0, %c1_i32 : i32
    %237 = arith.extui %236 : i1 to i32
    %c0_i32_67 = arith.constant 0 : i32
    %238 = arith.cmpi ne, %237, %c0_i32_67 : i32
    scf.if %238 {
      %239 = vector.shape_cast %234 : vector<16x128xf32> to vector<2x8x128xf32>
      %c0_68 = arith.constant 0 : index
      %c0_69 = arith.constant 0 : index
      %c0_70 = arith.constant 0 : index
      %240 = vector.load %arg14[%c0_68, %c0_69, %c0_70] : memref<2x8x128xf32, #tpu.memory_space<vmem>>, vector<2x8x128xf32>
      tpu.vector_store %arg14[%c0_68, %c0_69, %c0_70], %239 {strides = array<i32>} : memref<2x8x128xf32, #tpu.memory_space<vmem>>, vector<2x8x128xf32>,
    } else {
    }
    return
  }
  func.func @transform_0(%arg0: i32) -> (i32, i32, i32) {
    %c0_i32 = arith.constant 0 : i32
    %c0_i32_0 = arith.constant 0 : i32
    %c0_i32_1 = arith.constant 0 : i32
    %c0_i32_2 = arith.constant 0 : i32
    return %c0_i32, %c0_i32_0, %c0_i32_1 : i32, i32, i32
  }
  func.func @transform_1(%arg0: i32) -> (i32, i32, i32) {
    %c0_i32 = arith.constant 0 : i32
    %c0_i32_0 = arith.constant 0 : i32
    %c0_i32_1 = arith.constant 0 : i32
    return %arg0, %c0_i32, %c0_i32_0 : i32, i32, i32
  }
  func.func @transform_2(%arg0: i32) -> (i32, i32, i32) {
    %c0_i32 = arith.constant 0 : i32
    %c0_i32_0 = arith.constant 0 : i32
    %c0_i32_1 = arith.constant 0 : i32
    return %arg0, %c0_i32, %c0_i32_0 : i32, i32, i32
  }
  func.func @transform_3(%arg0: i32) -> (i32, i32, i32) {
    %c0_i32 = arith.constant 0 : i32
    %c0_i32_0 = arith.constant 0 : i32
    %c0_i32_1 = arith.constant 0 : i32
    return %arg0, %c0_i32, %c0_i32_0 : i32, i32, i32
  }
  func.func @transform_4(%arg0: i32) -> (i32, i32, i32) {
    %c0_i32 = arith.constant 0 : i32
    %c0_i32_0 = arith.constant 0 : i32
    %c0_i32_1 = arith.constant 0 : i32
    return %arg0, %c0_i32, %c0_i32_0 : i32, i32, i32
  }
  func.func @transform_5(%arg0: i32) -> (i32, i32) {
    %c0_i32 = arith.constant 0 : i32
    %c0_i32_0 = arith.constant 0 : i32
    %c0_i32_1 = arith.constant 0 : i32
    return %c0_i32, %c0_i32_0 : i32, i32
  }
  func.func @transform_6(%arg0: i32) -> (i32, i32) {
    %c0_i32 = arith.constant 0 : i32
    %c0_i32_0 = arith.constant 0 : i32
    %c0_i32_1 = arith.constant 0 : i32
    return %c0_i32, %c0_i32_0 : i32, i32
  }
  func.func @transform_7(%arg0: i32) -> (i32, i32) {
    %c0_i32 = arith.constant 0 : i32
    %c0_i32_0 = arith.constant 0 : i32
    %c0_i32_1 = arith.constant 0 : i32
    return %c0_i32, %c0_i32_0 : i32, i32
  }
  func.func @transform_8(%arg0: i32) -> (i32, i32) {
    %c0_i32 = arith.constant 0 : i32
    %c0_i32_0 = arith.constant 0 : i32
    %c0_i32_1 = arith.constant 0 : i32
    return %c0_i32, %c0_i32_0 : i32, i32
  }
  func.func @transform_9(%arg0: i32) -> (i32, i32) {
    %c0_i32 = arith.constant 0 : i32
    %c0_i32_0 = arith.constant 0 : i32
    %c0_i32_1 = arith.constant 0 : i32
    return %c0_i32, %c0_i32_0 : i32, i32
  }
  func.func @transform_10(%arg0: i32) -> (i32, i32) {
    %c0_i32 = arith.constant 0 : i32
    %c0_i32_0 = arith.constant 0 : i32
    %c0_i32_1 = arith.constant 0 : i32
    return %c0_i32, %c0_i32_0 : i32, i32
  }
  func.func @transform_11(%arg0: i32) -> (i32, i32) {
    %c0_i32 = arith.constant 0 : i32
    %c0_i32_0 = arith.constant 0 : i32
    %c0_i32_1 = arith.constant 0 : i32
    return %c0_i32, %c0_i32_0 : i32, i32
  }
  func.func @transform_12(%arg0: i32) -> (i32, i32) {
    %c0_i32 = arith.constant 0 : i32
    %c0_i32_0 = arith.constant 0 : i32
    %c0_i32_1 = arith.constant 0 : i32
    return %c0_i32, %c0_i32_0 : i32, i32
  }
  func.func @transform_13(%arg0: i32) -> (i32, i32, i32) {
    %c0_i32 = arith.constant 0 : i32
    %c0_i32_0 = arith.constant 0 : i32
    %c0_i32_1 = arith.constant 0 : i32
    %c0_i32_2 = arith.constant 0 : i32
    return %c0_i32, %c0_i32_0, %c0_i32_1 : i32, i32, i32
  }
}

</mosaic_0001>

<bundles_post_ra>
// kernel: gpt_forward.3
= control target key start
LH: loop header
LB: loop body
LE: loop exit
PB: predicated region body
PF: predicated region fallthrough
CT: control target
= control target key end

     0   :  { %s1087_s0 = inlined_call_operand.vmem [shape: f32[2,8,128], index: 0, kind: input, shape index: {}]   ;;  %s1088_s1 = inlined_call_operand.vmem [shape: f32[1,128], index: 1, kind: input, shape index: {}]   ;;  %s1089_s2 = inlined_call_operand.vmem [shape: f32[1,128], index: 2, kind: input, shape index: {}]   ;;  %s1090_s3 = inlined_call_operand.vmem [shape: bf16[128,256], index: 3, kind: input, shape index: {}]   ;;  %s1091_s4 = inlined_call_operand.hbm [shape: f32[2,8,256], index: 4, kind: output, shape index: {}]  }
   0x1   :  { %1092 = sst [smem:[#allocation7_spill]] %s1090_s3 }
   0x2   :  { %9 = vsyncpa [#allocation5], 0 }
   0x3   :  { %11 = vsyncpa [#allocation5 + $0x1], 0  ;;  %s870_s15 = smov 0   ;;  %s872_s16 = smov 0  }
   0x4   :  { %s874_s17 = smov 0   ;;  %s876_s18 = smov 0  }
   0x5   :  { %s878_s19 = smov 0   ;;  %s880_s20 = smov 0  }
   0x6   :  { %s882_s21 = smov 0   ;;  %s884_s22 = smov 0  }
   0x7   :  { %s886_s23 = smov 0   ;;  %s888_s24 = smov 0  }
   0x8 LB: > { %s576_s25 = sadd.s32 4294967295, %s840_s24   ;;  %s577_s26 = sadd.s32 4294967294, %s840_s24   ;;  %s840_s24 = sphi %s888_s24, %s17_s24   ;;  %s836_s23 = sphi %s886_s23, %s1105_s23   ;;  %s832_s22 = sphi %s884_s22, %s1104_s22   ;;  %s828_s21 = sphi %s882_s21, %s1103_s21   ;;  %s824_s20 = sphi %s880_s20, %s1102_s20   ;;  %s820_s19 = sphi %s878_s19, %s1101_s19   ;;  %s816_s18 = sphi %s876_s18, %s1100_s18   ;;  %s812_s17 = sphi %s874_s17, %s1099_s17   ;;  %s808_s16 = sphi %s872_s16, %s1098_s16   ;;  %s804_s15 = sphi %s870_s15, %s1097_s15  }
   0x9   : > { %s26_s27 = sadd.s32 1, %s832_s22  ;;  %s29_s28 = sadd.s32 1, %s836_s23 }
   0xa   : > { %p27_p0 = scmp.ge.s32.totalorder %s26_s27, 2  ;;  %s104_s29 = sadd.s32 1, %s820_s19 }
   0xb   : > { %p111_p1 = scmp.ne.s32.totalorder %s820_s19, %s816_s18  ;;  %p112_p2 = scmp.eq.s32.totalorder %s840_s24, 0 }
   0xc   : > { %s1107_s27 = smov (%p27_p0, %s26_s27), 0  ;;  %s1109_s28 = smov (!%p27_p0, %s29_s28), %s836_s23 }
   0xd   : > { %s101_s30 = ssub.s32 %s832_s22, %s1107_s27  ;;  %p933_p3 = por %p112_p2, %p111_p1 }
   0xe   : > { %p31_p4 = scmp.ge.s32.totalorder %s1109_s28, 2  ;;  %p102_p5 = scmp.eq.s32.totalorder %s101_s30, 0 }
   0xf   : > { %s132_s6 = sadd.s32 1, %s812_s17  ;;  %p142_p6 = scmp.ne.s32.totalorder %s812_s17, %s808_s16 }
  0x10   : > { %s1111_s28 = smov (%p31_p4, %s1109_s28), 0  ;;  %p143_p7 = scmp.eq.s32.totalorder %s576_s25, 3 }
  0x11   : > { %s943_s7 = scalar_select %p102_p5, %s820_s19, %s104_s29  }
  0x12   : > { %s127_s8 = ssub.s32 %s836_s23, %s1111_s28  ;;  %p148_p8 = scmp.ne.s32.totalorder %s808_s16, %s804_s15 }
  0x13   : > { %s129_s9 = sor.u32 %s127_s8, %s101_s30  ;;  %p949_p10 = por %p143_p7, %p142_p6 }
  0x14   : > { %p130_p9 = scmp.eq.s32.totalorder %s129_s9, 0  ;;  %p149_p11 = scmp.eq.s32.totalorder %s577_s26, 3 }
  0x15   : > { %p579_p13 = scmp.ge.s32.totalorder %s840_s24, 4 }
  0x16   : > { %s954_s11 = scalar_select %p130_p9, %s812_s17, %s132_s6  }
  0x17   : > { %p956_p12 = por %p149_p11, %p148_p8  ;;  %171 = sbr.rel (%p579_p13) target bundleno = 50 (0x32), region = 24 }
  0x1e   : > { %181 = sbr.rel (!%p933_p3) target bundleno = 50 (0x32), region = 32  ;;  %s183_s13 = sand.u32 (%p933_p3), 1, %s820_s19  }
  0x1f   : > { %s581_s14 = sshll.u32 (%p933_p3), %s832_s22, 2  ;;  %s580_s25 = sshll.u32 (%p933_p3), %s183_s13, 6 }
  0x20   : > { %s1096_s3 = sld [smem:[#allocation7_spill]] (%p933_p3)  ;;  %s185_s5 = scalar_lea.vmem (%p933_p3), [#allocation3], %s580_s25 }
  0x26   : > { %s968_s26 = scalar_lea.vmem %s1096_s3, %s581_s14 }
  0x27   : > { %v203_v0 = vld [vmem:[%s968_s26] sm:$0xf]  ;;  %v205_v1 = vld [vmem:[%s968_s26 + $0x8] sm:$0xf]  ;;  %v207_v2 = vld [vmem:[%s968_s26 + $0x10] sm:$0xf] }
  0x28   : > { %204 = vst [vmem:[%s185_s5] sm:$0xf] %v203_v0  ;;  %206 = vst [vmem:[%s185_s5 + $0x4] sm:$0xf] %v205_v1  ;;  %v209_v3 = vld [vmem:[%s968_s26 + $0x18] sm:$0xf] }
  0x29   : > { %v211_v4 = vld [vmem:[%s968_s26 + $0x20] sm:$0xf]  ;;  %208 = vst [vmem:[%s185_s5 + $0x8] sm:$0xf] %v207_v2  ;;  %210 = vst [vmem:[%s185_s5 + $0xc] sm:$0xf] %v209_v3 }
  0x2a   : > { %212 = vst [vmem:[%s185_s5 + $0x10] sm:$0xf] %v211_v4  ;;  %v213_v5 = vld [vmem:[%s968_s26 + $0x28] sm:$0xf]  ;;  %v215_v6 = vld [vmem:[%s968_s26 + $0x30] sm:$0xf] }
  0x2b   : > { %v217_v7 = vld [vmem:[%s968_s26 + $0x38] sm:$0xf]  ;;  %214 = vst [vmem:[%s185_s5 + $0x14] sm:$0xf] %v213_v5  ;;  %216 = vst [vmem:[%s185_s5 + $0x18] sm:$0xf] %v215_v6 }
  0x2c   : > { %218 = vst [vmem:[%s185_s5 + $0x1c] sm:$0xf] %v217_v7  ;;  %v219_v8 = vld [vmem:[%s968_s26 + $0x40] sm:$0xf]  ;;  %v221_v9 = vld [vmem:[%s968_s26 + $0x48] sm:$0xf] }
  0x2d   : > { %v223_v10 = vld [vmem:[%s968_s26 + $0x50] sm:$0xf]  ;;  %220 = vst [vmem:[%s185_s5 + $0x20] sm:$0xf] %v219_v8  ;;  %222 = vst [vmem:[%s185_s5 + $0x24] sm:$0xf] %v221_v9 }
  0x2e   : > { %224 = vst [vmem:[%s185_s5 + $0x28] sm:$0xf] %v223_v10  ;;  %v225_v11 = vld [vmem:[%s968_s26 + $0x58] sm:$0xf]  ;;  %v227_v12 = vld [vmem:[%s968_s26 + $0x60] sm:$0xf] }
  0x2f   : > { %v229_v13 = vld [vmem:[%s968_s26 + $0x68] sm:$0xf]  ;;  %226 = vst [vmem:[%s185_s5 + $0x2c] sm:$0xf] %v225_v11  ;;  %228 = vst [vmem:[%s185_s5 + $0x30] sm:$0xf] %v227_v12 }
  0x30   : > { %230 = vst [vmem:[%s185_s5 + $0x34] sm:$0xf] %v229_v13  ;;  %v231_v14 = vld [vmem:[%s968_s26 + $0x70] sm:$0xf]  ;;  %v233_v15 = vld [vmem:[%s968_s26 + $0x78] sm:$0xf] }
  0x31   : > { %232 = vst [vmem:[%s185_s5 + $0x38] sm:$0xf] %v231_v14  ;;  %234 = vst [vmem:[%s185_s5 + $0x3c] sm:$0xf] %v233_v15 }
  0x32 PF: > { %p582_p0 = scmp.ge.s32.totalorder %s840_s24, 1  ;;  %p288_p1 = scmp.lt.s32.totalorder %s840_s24, 5 }
  0x34   : > { %p289_p2 = pnand %p582_p0, %p288_p1 }
  0x35   : > { %s295_s6 = sand.u32 (!%p289_p2), 1, %s816_s18   ;;  %s321_s8 = sand.u32 (!%p289_p2), 1, %s808_s16  }
  0x36   : > { %292 = sbr.rel (%p289_p2) target bundleno = 640 (0x280), region = 73  ;;  %s583_s9 = sshll.u32 (!%p289_p2), %s295_s6, 6 }
  0x37   : > { %s992_s13 = sshll.u32 (!%p289_p2), %s321_s8, 3  ;;  %p324_p3 = scmp.lt.s32.totalorder (!%p289_p2), %s828_s21, 1 }
  0x38   : > { %s999_s5 = scalar_lea.vmem (!%p289_p2), [#allocation3], %s583_s9  ;;  %s323_s3 = scalar_lea.vmem (!%p289_p2), [#allocation4], %s992_s13 }
  0x39   : > { %p586_p4 = scmp.ne.s32.totalorder (!%p289_p2), %s824_s20, 0 }
  0x3d   : > { %s325_s14 = scalar_select %p324_p3, %s828_s21, 1 }
  0x3e   : > { %332 = sbr.rel (%p586_p4) target bundleno = 380 (0x17c), region = 81  ;;  %v587_v25 = vld [vmem:[%s1088_s1] ss:$0 sm:$0xff] (!%p586_p4) }
  0x3f   : > { %s585_s25 = sshll.u32 %s325_s14, 3  ;;  %v588_v27 = vld [vmem:[%s1089_s2] ss:$0 sm:$0xff] (!%p586_p4) }
  0x40   : > { %s327_s26 = scalar_lea.vmem %s1087_s0, %s585_s25 }
  0x41   : > { %v333_v16 = vld [vmem:[%s327_s26] sm:$0xff] (!%p586_p4) }
  0x42   : > { %336 = vadd.xlane.f32.xlu0 (!%p586_p4), %v333_v16 }
  0xcf   : > { %v337_v17 = vpop.xlane.xlu0 %336 }
  0xd0   : > { %v339_v18 = vmul.f32 0.0078125, %v337_v17 }
  0xd2   : > { %v340_v19 = vsub.f32 %v333_v16, %v339_v18 }
  0xd4   : > { %v341_v20 = vmul.f32 %v340_v19, %v340_v19 }
  0xd6   : > { %342 = vadd.xlane.f32.xlu0 %v341_v20 }
 0x163   : > { %v343_v21 = vpop.xlane.xlu0 %342 }
 0x164   : > { %v344_v22 = vmul.f32 0.0078125, %v343_v21 }
 0x166   : > { %v345_v23 = vadd.f32 1e-05, %v344_v22 }
 0x168   : > { %720 = vrsqrt.f32 %v345_v23 }
 0x172   : > { %v721_v24 = vpop.eup %720 }
 0x173   : > { %v347_v26 = vmul.f32 %v721_v24, %v340_v19 }
 0x175   : > { %v354_v28 = vmul.f32 %v587_v25, %v347_v26 }
 0x177   : > { %v361_v29 = vadd.f32 %v588_v27, %v354_v28 }
 0x179   : > { %v362_v30 = vpack.c.bf16 %v361_v29, %v361_v29 }
 0x17b   : > { %363 = vst [vmem:[#allocation2] sm:$0xf] %v362_v30 }
 0x17c PF: > { %v722_v31 = vld [vmem:[%s999_s5] sm:$0xff]   ;;  %v842_v32 = vmov 0.0   ;;  %v723_v33 = vld [vmem:[%s999_s5 + $0x8] sm:$0xff]   ;;  %vm843_vm0 = vmmov 0   ;;  %v724_v34 = vld [vmem:[%s999_s5 + $0x10] sm:$0xff]   ;;  %s598_s25 = sshll.u32 %s828_s21, 1 }
 0x17d   : > { %611 = vmatprep.subr.bf16.mxu0 %v842_v32  ;;  %627 = vmatprep.mubr.msk.bf16.mxu0 %vm843_vm0, %v842_v32  ;;  %v725_v35 = vld [vmem:[%s999_s5 + $0x18] sm:$0xff]   ;;  %v726_v36 = vld [vmem:[%s999_s5 + $0x20] sm:$0xff]   ;;  %v727_v37 = vld [vmem:[%s999_s5 + $0x28] sm:$0xff]   ;;  %s482_s29 = sadd.s32 %s824_s20, %s598_s25  ;;  %s486_s26 = sshll.u32 %s323_s3, 4  ;;  %s1026_s26 = int_to_ptr.vmem [resolvable:$true] %s486_s26 }
 0x17e   : > { %612 = vmatpush3.bf16.msra.mxu0 %v722_v31  ;;  %v728_v38 = vld [vmem:[%s999_s5 + $0x30] sm:$0xff]   ;;  %v729_v39 = vld [vmem:[%s999_s5 + $0x38] sm:$0xff]   ;;  %s599_s30 = sshll.u32 %s482_s29, 7  ;;  %s471_s20 = scalar_lea.sflag [#allocation5], %s321_s8 }
 0x17f   : > { %613 = vmatprep.subr.bf16.mxu0 %v842_v32  ;;  %s1024_s9 = scalar_lea.hbm %s1091_s4, %s599_s30  ;;  %s730_s21 = scalar_lea.vmem %s1026_s26, 128 }
 0x180   : > { %p731_p5 = scmp.ne.s32.totalorder %s1026_s26, %s730_s21  ;;  %s844_s5 = smov [#allocation4]  }
 0x181   : > { %s734_s14 = sshll.u32 %s844_s5, 4  ;;  %s735_s14 = int_to_ptr.vmem [resolvable:$false] %s734_s14 }
 0x182   : > { %614 = vmatpush3.bf16.msra.mxu0 %v723_v33  ;;  %v364_v40 = vld [vmem:[#allocation2] sm:$0xf]  ;;  %p732_p6 = pnand %p731_p5, %p949_p10  ;;  %s736_s25 = scalar_lea.vmem %s735_s14, 256 }
 0x183   : > { %615 = vmatprep.subr.bf16.mxu0 %v842_v32  ;;  %p737_p8 = scmp.lt.s32.totalorder %s1026_s26, %s735_s14  ;;  %p738_p9 = scmp.lt.s32.totalorder %s736_s25, %s730_s21 }
 0x184   : > { %p733_p7 = pneg %p732_p6 }
 0x185   : > { %p739_p11 = por %p738_p9, %p737_p8 }
 0x186   : > { %616 = vmatpush3.bf16.msra.mxu0 %v724_v34 }
 0x187   : > { %617 = vmatprep.subr.bf16.mxu0 %v842_v32  ;;  %p740_p13 = pnand %p739_p11, %p733_p7 }
 0x18a   : > { %618 = vmatpush3.bf16.msra.mxu0 %v725_v35 }
 0x18b   : > { %619 = vmatprep.subr.bf16.mxu0 %v842_v32 }
 0x18e   : > { %620 = vmatpush3.bf16.msra.mxu0 %v726_v36 }
 0x18f   : > { %621 = vmatprep.subr.bf16.mxu0 %v842_v32 }
 0x192   : > { %622 = vmatpush3.bf16.msra.mxu0 %v727_v37 }
 0x193   : > { %623 = vmatprep.subr.bf16.mxu0 %v842_v32 }
 0x196   : > { %624 = vmatpush3.bf16.msra.mxu0 %v728_v38 }
 0x197   : > { %625 = vmatprep.subr.bf16.mxu0 %v842_v32 }
 0x19a   : > { %626 = vmatpush3.bf16.msra.mxu0 %v729_v39 }
 0x19d   : > { %628 = vmatmul.mubr.bf16.vlgmr.msra.gmra.mrb[0].mxu0 %v364_v40 }
 0x270   : > { %v463_v41 = vpop.f32.mrb[0].mxu0 }
 0x271   : > { %469 = vst [vmem:[%s323_s3] sm:$0xff] %v463_v41  ;;  %v629_v42 = vpop.f32.mrb[1].mxu0 }
 0x272   : > { %v466_v43 = vpop.f32.mrb[2].mxu0 }
 0x273   : > { %743 = shalt.err (!%p740_p13)
}
 0x274   : > { %s744_s3 = scalar_lea.hbm %s1024_s9, 128  ;;  %s748_s29 = scalar_lea.hbm %s1091_s4, 512 }
 0x275   : > { %p745_p0 = scmp.ne.s32.totalorder %s1024_s9, %s744_s3  ;;  %p749_p3 = scmp.lt.u32.totalorder %s1024_s9, %s1091_s4 }
 0x276   : > { %p750_p4 = scmp.lt.u32.totalorder %s748_s29, %s744_s3  ;;  %p752_p6 = scmp.lt.u32.totalorder %s744_s3, %s1024_s9 }
 0x277   : > { %p746_p1 = pnand %p745_p0, %p949_p10 }
 0x278   : > { %p751_p5 = por %p750_p4, %p749_p3 }
 0x279   : > { %p747_p2 = pneg %p746_p1 }
 0x27a   : > { %p753_p7 = por %p752_p6, %p751_p5 }
 0x27c   : > { %p754_p8 = pnand %p753_p7, %p747_p2 }
 0x27e   : > { %757 = shalt.err (!%p754_p8)
}
 0x27f   : > { %631 = dma.vmem_to_hbm [thread:$0]  (%p949_p10), %s1026_s26, 128, %s1024_s9, %s471_s20   ;;  %v630_v44 = vpop.f32.mrb[3].mxu0 }
 0x280 PF: > { %p637_p9 = scmp.ge.s32.totalorder %s840_s24, 2  ;;  %s498_s6 = sand.u32 1, %s804_s15  }
 0x281   : > { %s499_s21 = scalar_lea.sflag [#allocation5], %s498_s6 }
 0x282   : > { %p634_p11 = pnand %p637_p9, %p956_p12 }
 0x284   : > { %799 = dma.done.wait (!%p634_p11), %s499_s21, 128  }
 0x285   : > { %801 = vsyncadd (!%p634_p11), %s499_s21, 4294967168  ;;  %s17_s24 = sadd.s32 1, %s840_s24   ;;  %s1097_s15 = smov %s808_s16 }
 0x286   : > { %p14_p13 = scmp.ge.s32.totalorder %s17_s24, 6   ;;  %s1098_s16 = smov %s812_s17 }
 0x287   : > { %s1099_s17 = smov %s954_s11  ;;  %s1100_s18 = smov %s820_s19 }
 0x288   : > { %s1101_s19 = smov %s943_s7  ;;  %s1102_s20 = smov %s832_s22 }
 0x289   : > { %s1103_s21 = smov %s836_s23  ;;  %s1104_s22 = smov %s1107_s27 }
 0x28a   : > { %s1105_s23 = smov %s1111_s28  ;;  %16 = sbr.rel (!%p14_p13) target bundleno = 8 (0x8), region = 124 }
 0x291   :  { %504 = vsyncpa [#allocation5], 1 }
 0x292   :  { %506 = vsyncpa [#allocation5 + $0x1], 1 }

// kernel: gpt_forward.2
= control target key start
LH: loop header
LB: loop body
LE: loop exit
PB: predicated region body
PF: predicated region fallthrough
CT: control target
= control target key end

     0   :  { %s4409_s0 = inlined_call_operand.vmem [shape: f32[2,8,128], index: 0, kind: input, shape index: {}]   ;;  %s4410_s1 = inlined_call_operand.hbm [shape: bf16[2,128,384], index: 1, kind: input, shape index: {}]   ;;  %s4411_s2 = inlined_call_operand.vmem [shape: bf16[2,128,128], index: 2, kind: input, shape index: {}]   ;;  %s4412_s3 = inlined_call_operand.hbm [shape: bf16[2,128,512], index: 3, kind: input, shape index: {}]   ;;  %s4413_s4 = inlined_call_operand.hbm [shape: bf16[2,512,128], index: 4, kind: input, shape index: {}]   ;;  %s4414_s5 = inlined_call_operand.vmem [shape: f32[2,128], index: 5, kind: input, shape index: {}]   ;;  %s4415_s6 = inlined_call_operand.vmem [shape: f32[2,128], index: 6, kind: input, shape index: {}]   ;;  %s4416_s7 = inlined_call_operand.vmem [shape: f32[2,384], index: 7, kind: input, shape index: {}]   ;;  %s4417_s8 = inlined_call_operand.vmem [shape: f32[2,128], index: 8, kind: input, shape index: {}]   ;;  %s4418_s9 = inlined_call_operand.vmem [shape: f32[2,128], index: 9, kind: input, shape index: {}]   ;;  %s4419_s10 = inlined_call_operand.vmem [shape: f32[2,128], index: 10, kind: input, shape index: {}]   ;;  %s4420_s11 = inlined_call_operand.vmem [shape: f32[2,512], index: 11, kind: input, shape index: {}]   ;;  %s4421_s12 = inlined_call_operand.vmem [shape: f32[2,128], index: 12, kind: input, shape index: {}]   ;;  %s4422_s13 = inlined_call_operand.vmem [shape: f32[2,8,128], index: 13, kind: output, shape index: {}]  }
   0x1   :  { %4430 = sst [smem:[#allocation14_spill]] %s4412_s3 }
   0x2   :  { %4431 = sst [smem:[#allocation15_spill]] %s4420_s11 }
   0x3   :  { %4432 = sst [smem:[#allocation16_spill]] %s4421_s12 }
   0x4   :  { %4433 = sst [smem:[#allocation17_spill]] %s4422_s13 }
   0x5   :  { %18 = vsyncpa [#allocation5], 0 }
   0x6   :  { %20 = vsyncpa [#allocation5 + $0x1], 0 }
   0x7   :  { %21 = vsyncpa [#allocation7], 0 }
   0x8   :  { %23 = vsyncpa [#allocation7 + $0x1], 0  ;;  %s3763_s25 = smov 0   ;;  %s3765_s26 = smov 0  }
   0x9   :  { %s3767_s27 = smov 0   ;;  %s3769_s28 = smov 0  }
   0xa LB: > { %4434 = sst [smem:[#allocation11_spill]] %s3671_s27  ;;  %s3782_s29 = sadd.s32 4294967295, %s3675_s28   ;;  %s3675_s28 = sphi %s3769_s28, %s4449_s28   ;;  %s3671_s27 = sphi %s3767_s27, %s4451_s27   ;;  %s3667_s26 = sphi %s3765_s26, %s4453_s26   ;;  %s3663_s25 = sphi %s3763_s25, %s4452_s25  }
   0xb   : > { %s3785_s30 = sadd.s32 1, %s3675_s28   ;;  %s57_s15 = sadd.s32 1, %s3671_s27 }
   0xc   : > { %4435 = sst [smem:[#allocation12_spill]] %s3785_s30  ;;  %s54_s14 = ssub.s32 %s3675_s28, %s3785_s30 }
   0xd   : > { %p55_p0 = scmp.eq.s32.totalorder %s54_s14, 0  ;;  %p64_p1 = scmp.ne.s32.totalorder %s3671_s27, %s3667_s26 }
   0xe   : > { %p65_p2 = scmp.eq.s32.totalorder %s3675_s28, 0  ;;  %p70_p3 = scmp.ne.s32.totalorder %s3667_s26, %s3663_s25 }
   0xf   : > { %s3795_s16 = scalar_select %p55_p0, %s3671_s27, %s57_s15  }
  0x10   : > { %p66_p4 = por %p65_p2, %p64_p1  ;;  %p71_p5 = scmp.eq.s32.totalorder %s3782_s29, 0 }
  0x11   : > { %4436 = sst [smem:[#allocation13_spill]] %s3795_s16  ;;  %p3323_p6 = scmp.lt.s32.totalorder %s3675_s28, 2 }
  0x12   : > { %p3799_p7 = por %p71_p5, %p70_p3  ;;  %s3804_s18 = sand.u32 1, %s3671_s27  }
  0x13   : > { %p3806_p8 = pnand %p3323_p6, %p66_p4  ;;  %s417_s20 = sand.u32 1, %s3675_s28  }
  0x14   : > { %s4437_s17 = scalar_select %p3799_p7, 1, 0 }
  0x15   : > { %s4424_s21 = sshll.u32 %s3804_s18, 8  ;;  %s4425_s22 = sshll.u32 %s3675_s28, 12 }
  0x16   : > { %s421_s23 = scalar_lea.vmem [#allocation6], %s4424_s21  ;;  %s4439_s3 = sld [smem:[#allocation14_spill]] }
  0x17   : > { %s428_s24 = sshll.u32 %s421_s23, 4  ;;  %s3824_s16 = scalar_lea.sflag [#allocation7], %s417_s20  ;;  %s3822_s24 = int_to_ptr.vmem [resolvable:$true] %s428_s24 }
  0x18   : > { %p3830_p10 = pneg %p3806_p8 }
  0x1c   : > { %s3820_s15 = scalar_lea.hbm %s4439_s3, %s4425_s22  ;;  %s3552_s14 = scalar_lea.hbm %s4439_s3, 8192 }
  0x1d   : > { %s3547_s27 = scalar_lea.hbm %s3820_s15, 4096  ;;  %p3553_p13 = scmp.lt.u32.totalorder %s3820_s15, %s4439_s3 }
  0x1e   : > { %p3548_p9 = scmp.ne.s32.totalorder %s3820_s15, %s3547_s27  ;;  %p3554_p0 = scmp.lt.u32.totalorder %s3552_s14, %s3547_s27 }
  0x1f   : > { %p3556_p2 = scmp.lt.u32.totalorder %s3547_s27, %s3820_s15 }
  0x20   : > { %p3550_p11 = pnand %p3830_p10, %p3548_p9  ;;  %p3555_p1 = por %p3554_p0, %p3553_p13 }
  0x22   : > { %p3551_p12 = pneg %p3550_p11  ;;  %p3557_p3 = por %p3556_p2, %p3555_p1 }
  0x24   : > { %p3558_p4 = pnand %p3557_p3, %p3551_p12 }
  0x26   : > { %3561 = shalt.err (!%p3558_p4)
}
  0x27   : > { %s3562_s20 = scalar_lea.vmem %s3822_s24, 4096  ;;  %s3677_s23 = smov [#allocation6]  }
  0x28   : > { %p3563_p5 = scmp.ne.s32.totalorder %s3822_s24, %s3562_s20  ;;  %s3567_s25 = sshll.u32 %s3677_s23, 4  ;;  %s3568_s25 = int_to_ptr.vmem [resolvable:$false] %s3567_s25 }
  0x29   : > { %s3569_s30 = scalar_lea.vmem %s3568_s25, 8192  ;;  %p3570_p11 = scmp.lt.s32.totalorder %s3822_s24, %s3568_s25 }
  0x2a   : > { %p3565_p6 = pnand %p3563_p5, %p3830_p10  ;;  %p3571_p7 = scmp.lt.s32.totalorder %s3569_s30, %s3562_s20 }
  0x2c   : > { %p3566_p9 = pneg %p3565_p6  ;;  %p3572_p13 = por %p3571_p7, %p3570_p11 }
  0x2e   : > { %p3573_p0 = pnand %p3572_p13, %p3566_p9 }
  0x30   : > { %3576 = shalt.err (!%p3573_p0)
}
  0x31   : > { %s3678_s27 = smov 256   ;;  %s3679_s22 = smov 16  }
  0x32   : > { %3319 = dma.hbm_to_vmem [thread:$0]  (!%p3806_p8), %s3820_s15, 4096, %s3822_s24, %s3824_s16, %s3678_s27, %s3678_s27, %s3679_s22  }
  0x33   : > { %s4441_s14 = sshll.u32 %s3675_s28, 12  ;;  %s4442_s30 = sshll.u32 %s3804_s18, 8 }
  0x34   : > { %s3859_s25 = scalar_lea.hbm %s4413_s4, %s4441_s14  ;;  %s442_s3 = scalar_lea.vmem [#allocation8], %s4442_s30 }
  0x35   : > { %s449_s13 = sshll.u32 %s442_s3, 4  ;;  %p2921_p7 = scmp.ge.s32.totalorder %s3675_s28, 1  ;;  %s3864_s13 = int_to_ptr.vmem [resolvable:$true] %s449_s13 }
  0x36   : > { %p457_p12 = scmp.lt.s32.totalorder %s3675_s28, 3  ;;  %s3304_s12 = smul.u32 192, %s3804_s18 }
  0x37   : > { %s3305_s24 = smul.u32 3072, %s3675_s28  ;;  %s389_s20 = scalar_lea.sflag [#allocation5], %s3804_s18 }
  0x38   : > { %p3868_p1 = pnand %p2921_p7, %p457_p12  ;;  %s392_s3 = scalar_lea.vmem [#allocation4], %s3304_s12 }
  0x39   : > { %s3876_s22 = scalar_lea.hbm %s4410_s1, %s3305_s24  ;;  %s399_s14 = sshll.u32 %s392_s3, 4  ;;  %s3878_s14 = int_to_ptr.vmem [resolvable:$true] %s399_s14 }
  0x3a   : > { %s4443_s11 = scalar_select %p3868_p1, 1, 0 }
  0x3b   : > { %s3577_s23 = scalar_lea.hbm %s3876_s22, 3072  ;;  %s3582_s15 = scalar_lea.hbm %s4410_s1, 6144 }
  0x3c   : > { %p3578_p2 = scmp.ne.s32.totalorder %s3876_s22, %s3577_s23  ;;  %p3583_p5 = scmp.lt.u32.totalorder %s3876_s22, %s4410_s1 }
  0x3d   : > { %p3584_p6 = scmp.lt.u32.totalorder %s3582_s15, %s3577_s23  ;;  %p3586_p11 = scmp.lt.u32.totalorder %s3577_s23, %s3876_s22 }
  0x3e   : > { %p3580_p3 = pnand %p3578_p2, %p3830_p10 }
  0x3f   : > { %p3585_p9 = por %p3584_p6, %p3583_p5 }
  0x40   : > { %p3581_p4 = pneg %p3580_p3 }
  0x41   : > { %p3587_p13 = por %p3586_p11, %p3585_p9 }
  0x43   : > { %p3588_p0 = pnand %p3587_p13, %p3581_p4 }
  0x45   : > { %3591 = shalt.err (!%p3588_p0)
}
  0x46   : > { %s3592_s12 = scalar_lea.vmem %s3878_s14, 3072  ;;  %s3680_s3 = smov [#allocation4]  }
  0x47   : > { %p3593_p7 = scmp.ne.s32.totalorder %s3878_s14, %s3592_s12  ;;  %s3597_s28 = sshll.u32 %s3680_s3, 4  ;;  %s3598_s28 = int_to_ptr.vmem [resolvable:$false] %s3597_s28 }
  0x48   : > { %s3599_s30 = scalar_lea.vmem %s3598_s28, 6144  ;;  %p3600_p3 = scmp.lt.s32.totalorder %s3878_s14, %s3598_s28 }
  0x49   : > { %p3595_p12 = pnand %p3593_p7, %p3830_p10  ;;  %p3601_p1 = scmp.lt.s32.totalorder %s3599_s30, %s3592_s12 }
  0x4b   : > { %p3596_p2 = pneg %p3595_p12  ;;  %p3602_p5 = por %p3601_p1, %p3600_p3 }
  0x4d   : > { %p3603_p6 = pnand %p3602_p5, %p3596_p2 }
  0x4f   : > { %3606 = shalt.err (!%p3603_p6)
}
  0x50   : > { %s3681_s23 = smov 192   ;;  %s3682_s15 = smov 12  }
  0x51   : > { %3316 = dma.hbm_to_vmem [thread:$0]  (!%p3806_p8), %s3876_s22, 3072, %s3878_s14, %s389_s20, %s3681_s23, %s3681_s23, %s3682_s15  }
  0x52   : > { %s3607_s24 = scalar_lea.hbm %s3859_s25, 4096  ;;  %s3612_s3 = scalar_lea.hbm %s4413_s4, 8192 }
  0x53   : > { %p3608_p4 = scmp.ne.s32.totalorder %s3859_s25, %s3607_s24  ;;  %p3613_p11 = scmp.lt.u32.totalorder %s3859_s25, %s4413_s4 }
  0x54   : > { %p3614_p13 = scmp.lt.u32.totalorder %s3612_s3, %s3607_s24  ;;  %p3616_p7 = scmp.lt.u32.totalorder %s3607_s24, %s3859_s25 }
  0x55   : > { %p3610_p1 = pnand %p3608_p4, %p3830_p10 }
  0x56   : > { %p3615_p0 = por %p3614_p13, %p3613_p11 }
  0x57   : > { %p3611_p9 = pneg %p3610_p1 }
  0x58   : > { %p3617_p12 = por %p3616_p7, %p3615_p0 }
  0x5a   : > { %p3618_p2 = pnand %p3617_p12, %p3611_p9 }
  0x5c   : > { %3621 = shalt.err (!%p3618_p2)
}
  0x5d   : > { %s3622_s18 = scalar_lea.vmem %s3864_s13, 4096  ;;  %s3683_s22 = smov [#allocation8]  }
  0x5e   : > { %p3623_p3 = scmp.ne.s32.totalorder %s3864_s13, %s3622_s18  ;;  %s3627_s14 = sshll.u32 %s3683_s22, 4  ;;  %s3628_s14 = int_to_ptr.vmem [resolvable:$false] %s3627_s14 }
  0x5f   : > { %s3629_s20 = scalar_lea.vmem %s3628_s14, 8192  ;;  %p3630_p4 = scmp.lt.s32.totalorder %s3864_s13, %s3628_s14 }
  0x60   : > { %p3625_p5 = pnand %p3623_p3, %p3830_p10  ;;  %p3631_p1 = scmp.lt.s32.totalorder %s3629_s20, %s3622_s18 }
  0x62   : > { %p3626_p6 = pneg %p3625_p5  ;;  %p3632_p11 = por %p3631_p1, %p3630_p4 }
  0x64   : > { %p3633_p13 = pnand %p3632_p11, %p3626_p6 }
  0x66   : > { %3636 = shalt.err (!%p3633_p13)
}
  0x67   : > { %s3684_s23 = smov 64   ;;  %s3685_s15 = smov 4  }
  0x68   : > { %3322 = dma.hbm_to_vmem [thread:$0]  (!%p3806_p8), %s3859_s25, 4096, %s3864_s13, %s3824_s16, %s3684_s23, %s3684_s23, %s3685_s15  }
  0x69   : > { %p4444_p10 = scmp.ne.s32.totalorder %s4443_s11, 0 }
  0x6a   : > { %s463_s21 = sand.u32 (!%p4444_p10), 1, %s3667_s26   ;;  %p4445_p9 = scmp.ne.s32.totalorder (!%p4444_p10), %s4437_s17, 0 }
  0x6b   : > { %461 = sbr.rel (%p4444_p10) target bundleno = 4684 (0x124c), region = 72  ;;  %s464_s27 = scalar_lea.sflag (!%p4444_p10), [#allocation5], %s463_s21 }
  0x6c   : > { %s3306_s24 = smul.u32 (!%p4444_p10), 192, %s463_s21 }
  0x6e   : > { %s3929_s12 = scalar_lea.vmem (!%p4444_p10), [#allocation4], %s3306_s24 }
  0x72   : > { %3654 = dma.done.wait (%p4445_p9), %s464_s27, 3072  }
  0x73   : > { %3656 = vsyncadd (%p4445_p9), %s464_s27, 4294964224  ;;  %s3936_s3 = sand.u32 1, %s3782_s29   ;;  %s2922_s13 = sshll.u32 %s463_s21, 8 }
  0x74   : > { %s473_s11 = scalar_lea.sflag [#allocation7], %s3936_s3  ;;  %s3939_s16 = scalar_lea.vmem [#allocation6], %s2922_s13 }
  0x75   : > { %3658 = dma.done.wait (%p4445_p9), %s473_s11, 8192  }
  0x76   : > { %3660 = vsyncadd (%p4445_p9), %s473_s11, 4294959104  ;;  %p538_p8 = scmp.lt.s32.totalorder %s3782_s29, 1  ;;  %s3952_s22 = scalar_lea.vmem [#allocation8], %s2922_s13 }
  0x77   : > { %p2926_p0 = scmp.ne.s32.totalorder %s3782_s29, 0 }
  0x78   : > { %s539_s19 = scalar_select %p538_p8, %s3782_s29, 1 }
  0x79   : > { %547 = sbr.rel (%p2926_p0) target bundleno = 128 (0x80), region = 88  ;;  %v548_v0 = vld [vmem:[%s4409_s0] sm:$0xff] (!%p2926_p0)  ;;  %v549_v1 = vld [vmem:[%s4409_s0 + $0x8] sm:$0xff] (!%p2926_p0)  ;;  %v552_v2 = vlaneseq (!%p2926_p0)  ;;  %vm558_vm0 = vcmask (!%p2926_p0), 64512   ;;  %v3686_v5 = vmov (!%p2926_p0), -1e+30  }
  0x7a   : > { %s3057_s25 = sshll.u32 %s539_s19, 6  ;;  %550 = vst [vmem:[#allocation2] sm:$0xff] (!%p2926_p0), %v548_v0  ;;  %551 = vst [vmem:[#allocation2 + $0x8] sm:$0xff] (!%p2926_p0), %v549_v1 }
  0x7b   : > { %s3950_s18 = scalar_lea.vmem %s4411_s2, %s3057_s25  ;;  %v553_v3 = vshrl.u32 (!%p2926_p0), %v552_v2, 7  ;;  %v555_v4 = vand.u32 (!%p2926_p0), 127, %v552_v2 }
  0x7d   : > { %vm556_vm1 = vcmp.ge.s32.totalorder (!%p2926_p0), %v553_v3, %v555_v4 }
  0x7e   : > { %v557_v6 = vsel (!%p2926_p0), %vm556_vm1, 0.0, %v3686_v5 }
  0x7f   : > { %559 = vst.msk [vmem:[#allocation3] sm:$0xff] (!%p2926_p0), %vm558_vm0, %v557_v6 }
  0x80 PF: > { %v3369_v9 = vld [vmem:[%s3929_s12 + $0x4] ss:$12 sps:$4 sm:$0xff]   ;;  %v3371_v10 = vld [vmem:[%s3929_s12] ss:$12 sps:$4 sm:$0xff]   ;;  %v3687_v11 = vmov 0.0   ;;  %v3688_v37 = vmov 0   ;;  %s706_s24 = scalar_lea.vmem %s4414_s5, %s3782_s29  ;;  %s708_s13 = scalar_lea.vmem %s4415_s6, %s3782_s29  ;;  %v769_v60 = vlaneseq }
  0x81   : > { %v560_v7 = vld [vmem:[#allocation2] sm:$0xff]  ;;  %v561_v8 = vld [vmem:[#allocation2 + $0x8] sm:$0xff]  ;;  %3156 = vmatprep.subr.bf16.mxu1 %v3687_v11  ;;  %912 = vmatprep.subr.bf16.mxu0 %v3369_v9  ;;  %v3375_v22 = vld [vmem:[%s3929_s12 + $0x18] ss:$12 sps:$4 sm:$0xff]   ;;  %vm3689_vm2 = vmmov 0   ;;  %s714_s11 = sshra.s32 %s3782_s29, 1  ;;  %s723_s21 = scalar_lea.vmem %s4417_s8, %s3782_s29 }
  0x82   : > { %732 = vadd.xlane.f32.xlu0 %v560_v7  ;;  %v3372_v12 = vld [vmem:[%s3929_s12 + $0x8] ss:$12 sps:$4 sm:$0xff]   ;;  %913 = vmatpush1.bf16.msra.mxu0 %v3371_v10  ;;  %v3376_v23 = vld [vmem:[%s3929_s12 + $0x20] ss:$12 sps:$4 sm:$0xff]   ;;  %v3379_v25 = vld [vmem:[%s3929_s12 + $0x30] ss:$12 sps:$4 sm:$0xff]  }
  0x83   : > { %v3373_v13 = vld [vmem:[%s3929_s12 + $0x1c] ss:$12 sps:$4 sm:$0xff]   ;;  %3157 = vmatpush3.bf16.msra.mxu1 %v3372_v12  ;;  %v3377_v24 = vld [vmem:[%s3929_s12 + $0x34] ss:$12 sps:$4 sm:$0xff]   ;;  %v3380_v26 = vld [vmem:[%s3929_s12 + $0x38] ss:$12 sps:$4 sm:$0xff]   ;;  %944 = vmatprep.mubr.bf16.mxu0 %v3688_v37 }
  0x84   : > { %914 = vmatprep.subr.bf16.mxu0 %v3373_v13  ;;  %3158 = vmatprep.subr.bf16.mxu1 %v3687_v11  ;;  %v3381_v27 = vld [vmem:[%s3929_s12 + $0x4c] ss:$12 sps:$4 sm:$0xff]   ;;  %v3383_v28 = vld [vmem:[%s3929_s12 + $0x48] ss:$12 sps:$4 sm:$0xff]   ;;  %v3384_v29 = vld [vmem:[%s3929_s12 + $0x50] ss:$12 sps:$4 sm:$0xff]  }
  0x85   : > { %v3385_v30 = vld [vmem:[%s3929_s12 + $0x64] ss:$12 sps:$4 sm:$0xff]   ;;  %v3387_v31 = vld [vmem:[%s3929_s12 + $0x60] ss:$12 sps:$4 sm:$0xff]   ;;  %v3388_v32 = vld [vmem:[%s3929_s12 + $0x68] ss:$12 sps:$4 sm:$0xff]   ;;  %3172 = vmatprep.mubr.msk.bf16.mxu1 %vm3689_vm2, %v3687_v11 }
  0x86   : > { %734 = vadd.xlane.f32.xlu0 %v561_v8  ;;  %915 = vmatpush1.bf16.msra.mxu0 %v3375_v22  ;;  %v3389_v33 = vld [vmem:[%s3929_s12 + $0x7c] ss:$12 sps:$4 sm:$0xff]   ;;  %v3391_v34 = vld [vmem:[%s3929_s12 + $0x78] ss:$12 sps:$4 sm:$0xff]   ;;  %v3392_v35 = vld [vmem:[%s3929_s12 + $0x80] ss:$12 sps:$4 sm:$0xff]  }
  0x87   : > { %3159 = vmatpush3.bf16.msra.mxu1 %v3376_v23  ;;  %916 = vmatprep.subr.bf16.mxu0 %v3377_v24  ;;  %v3393_v36 = vld [vmem:[%s3929_s12 + $0x94] ss:$12 sps:$4 sm:$0xff]   ;;  %v3395_v38 = vld [vmem:[%s3929_s12 + $0x90] ss:$12 sps:$4 sm:$0xff]   ;;  %v3396_v39 = vld [vmem:[%s3929_s12 + $0x98] ss:$12 sps:$4 sm:$0xff]  }
  0x88   : > { %3160 = vmatprep.subr.bf16.mxu1 %v3687_v11  ;;  %v3397_v40 = vld [vmem:[%s3929_s12 + $0xac] ss:$12 sps:$4 sm:$0xff]   ;;  %v3399_v41 = vld [vmem:[%s3929_s12 + $0xa8] ss:$12 sps:$4 sm:$0xff]   ;;  %v3400_v42 = vld [vmem:[%s3929_s12 + $0xb0] ss:$12 sps:$4 sm:$0xff]   ;;  %s710_s12 = scalar_lea.vmem %s4418_s9, %s3782_s29 }
  0x89   : > { %v2930_v51 = vld [vmem:[%s706_s24] ss:$0 sm:$0xff]  ;;  %s2927_s19 = smul.u32 6, %s714_s11  ;;  %v4024_v61 = vshrl.u32 %v769_v60, 7  ;;  %vm1008_vm3 = vcmask 261120   ;;  %vm1133_vm4 = vcmask 1043456  }
  0x8a   : > { %917 = vmatpush1.bf16.msra.mxu0 %v3379_v25  ;;  %v2931_v55 = vld [vmem:[%s708_s13] ss:$0 sm:$0xff]  ;;  %vm1105_vm5 = vcmask 64512   ;;  %s3690_s20 = smov 96   ;;  %s3691_s17 = smov 64  }
  0x8b   : > { %3161 = vmatpush3.bf16.msra.mxu1 %v3380_v26  ;;  %918 = vmatprep.subr.bf16.mxu0 %v3381_v27  ;;  %s720_s25 = sadd.s32 %s2927_s19, %s3936_s3  ;;  %v775_v62 = vsub.s32 1, %v4024_v61  ;;  %v779_v0 = vsub.s32 2, %v4024_v61  ;;  %v771_v2 = vsub.s32 0, %v4024_v61  ;;  %s3692_s24 = smov 32  }
  0x8c   : > { %3162 = vmatprep.subr.bf16.mxu1 %v3687_v11  ;;  %s721_s14 = scalar_lea.vmem %s4416_s7, %s720_s25  ;;  %s712_s19 = scalar_lea.vmem %s4419_s10, %s3782_s29 }
  0x8d   : > { %v722_v63 = vld [vmem:[%s721_s14] ss:$2 sm:$0x7]  ;;  %s3058_s25 = sshll.u32 %s714_s11, 3  ;;  %s4447_s11 = sld [smem:[#allocation16_spill]] }
  0x8e   : > { %919 = vmatpush1.bf16.msra.mxu0 %v3383_v28  ;;  %v776_v1 = vrot.slane %v722_v63, %v775_v62  ;;  %s727_s28 = sadd.s32 %s3058_s25, %s3936_s3  ;;  %p3052_p7 = scmp.ne.s32.totalorder %s3782_s29, 1 }
  0x8f   : > { %3163 = vmatpush3.bf16.msra.mxu1 %v3384_v29  ;;  %920 = vmatprep.subr.bf16.mxu0 %v3385_v30 }
  0x90   : > { %3164 = vmatprep.subr.bf16.mxu1 %v3687_v11 }
  0x92   : > { %921 = vmatpush1.bf16.msra.mxu0 %v3387_v31  ;;  %v4070_v31 = vld [vmem:[#allocation3] sm:$0xff] }
  0x93   : > { %3165 = vmatpush3.bf16.msra.mxu1 %v3388_v32  ;;  %922 = vmatprep.subr.bf16.mxu0 %v3389_v33  ;;  %s730_s23 = scalar_lea.vmem %s4447_s11, %s3782_s29 }
  0x94   : > { %3166 = vmatprep.subr.bf16.mxu1 %v3687_v11 }
  0x96   : > { %923 = vmatpush1.bf16.msra.mxu0 %v3391_v34 }
  0x97   : > { %3167 = vmatpush3.bf16.msra.mxu1 %v3392_v35  ;;  %924 = vmatprep.subr.bf16.mxu0 %v3393_v36 }
  0x98   : > { %3168 = vmatprep.subr.bf16.mxu1 %v3687_v11 }
  0x9a   : > { %925 = vmatpush1.bf16.msra.mxu0 %v3395_v38 }
  0x9b   : > { %3169 = vmatpush3.bf16.msra.mxu1 %v3396_v39  ;;  %926 = vmatprep.subr.bf16.mxu0 %v3397_v40 }
  0x9c   : > { %3170 = vmatprep.subr.bf16.mxu1 %v3687_v11 }
  0x9e   : > { %927 = vmatpush1.bf16.msra.mxu0 %v3399_v41 }
  0x9f   : > { %3171 = vmatpush3.bf16.msra.mxu1 %v3400_v42  ;;  %3176 = vmatprep.subr.bf16.mxu0 %v3687_v11 }
  0xa0   : > { %3182 = vmatprep.subr.bf16.mxu1 %v3687_v11 }
 0x10f   : > { %v733_v14 = vpop.xlane.xlu0 %732 }
 0x110   : > { %v737_v15 = vmul.f32 0.0078125, %v733_v14  ;;  %v772_v14 = vrot.slane %v722_v63, %v771_v2 }
 0x112   : > { %v3967_v16 = vsub.f32 %v560_v7, %v737_v15  ;;  %v780_v7 = vrot.slane %v722_v63, %v779_v0  ;;  %v3401_v63 = vld [vmem:[%s3950_s18] sm:$0xff]  }
 0x113   : > { %v735_v17 = vpop.xlane.xlu0 %734 }
 0x114   : > { %v738_v18 = vmul.f32 0.0078125, %v735_v17  ;;  %v741_v19 = vmul.f32 %v3967_v16, %v3967_v16 }
 0x116   : > { %v3971_v20 = vsub.f32 %v561_v8, %v738_v18  ;;  %743 = vadd.xlane.f32.xlu1 %v741_v19 }
 0x118   : > { %v742_v21 = vmul.f32 %v3971_v20, %v3971_v20 }
 0x11a   : > { %745 = vadd.xlane.f32.xlu1 %v742_v21 }
 0x1a3   : > { %v744_v43 = vpop.xlane.xlu1 %743 }
 0x1a4   : > { %v747_v44 = vmul.f32 0.0078125, %v744_v43 }
 0x1a6   : > { %v749_v45 = vadd.f32 1e-05, %v747_v44 }
 0x1a7   : > { %v746_v46 = vpop.xlane.xlu1 %745 }
 0x1a8   : > { %3489 = vrsqrt.f32 %v749_v45  ;;  %v748_v47 = vmul.f32 0.0078125, %v746_v46 }
 0x1aa   : > { %v750_v48 = vadd.f32 1e-05, %v748_v47 }
 0x1ac   : > { %3491 = vrsqrt.f32 %v750_v48 }
 0x1b2   : > { %v3490_v49 = vpop.eup %3489 }
 0x1b3   : > { %v753_v50 = vmul.f32 %v3490_v49, %v3967_v16 }
 0x1b5   : > { %v759_v54 = vmul.f32 %v2930_v51, %v753_v50 }
 0x1b6   : > { %v3492_v52 = vpop.eup %3491 }
 0x1b7   : > { %v754_v53 = vmul.f32 %v3492_v52, %v3971_v20  ;;  %v765_v57 = vadd.f32 %v2931_v55, %v759_v54 }
 0x1b9   : > { %v760_v56 = vmul.f32 %v2930_v51, %v754_v53 }
 0x1bb   : > { %v766_v58 = vadd.f32 %v2931_v55, %v760_v56 }
 0x1bd   : > { %v767_v59 = vpack.c.bf16 %v766_v58, %v765_v57 }
 0x1bf   : > { %945 = vmatmul.mubr.bf16.vlgmr.msra.gmra.mrb[0].mxu0 %v767_v59  ;;  %3173 = vmatmul.mubr.bf16.vlgmr.msra.gmra.mrb[0].mxu1 %v767_v59 }
 0x1c0   : > { %3178 = vmatprep.mubr.msk.bf16.mxu0 %vm3689_vm2, %v3687_v11  ;;  %3184 = vmatprep.mubr.msk.bf16.mxu1 %vm3689_vm2, %v3687_v11 }
 0x292   : > { %v946_v3 = vpop.f32.mrb[0].mxu0  ;;  %v989_v4 = vpop.f32.mrb[0].mxu1 }
 0x293   : > { %v948_v5 = vpop.f32.mrb[1].mxu0  ;;  %v3174_v6 = vpop.f32.mrb[1].mxu1  ;;  %v990_v17 = vadd.f32 %v989_v4, %v780_v7  ;;  %v947_v20 = vadd.f32 %v946_v3, %v772_v14 }
 0x294   : > { %v949_v8 = vadd.f32 %v948_v5, %v776_v1  ;;  %v950_v9 = vpop.f32.mrb[2].mxu0  ;;  %v992_v10 = vpop.f32.mrb[2].mxu1  ;;  %v3402_v6 = vld [vmem:[%s3950_s18 + $0x8] sm:$0xff]  }
 0x295   : > { %v952_v12 = vpop.f32.mrb[3].mxu0  ;;  %v3175_v13 = vpop.f32.mrb[3].mxu1  ;;  %v993_v21 = vadd.f32 %v992_v10, %v780_v7  ;;  %v4047_v23 = vpack.c.bf16 %v990_v17, %v990_v17  ;;  %v951_v24 = vadd.f32 %v950_v9, %v772_v14  ;;  %v4050_v25 = vpack.c.bf16 %v947_v20, %v947_v20 }
 0x296   : > { %v4038_v15 = vpack.c.bf16 %v949_v8, %v949_v8  ;;  %v953_v16 = vadd.f32 %v952_v12, %v776_v1 }
 0x297   : > { %v4052_v26 = vpack.c.bf16 %v993_v21, %v993_v21  ;;  %v4054_v27 = vpack.c.bf16 %v951_v24, %v951_v24  ;;  %v1135_v28 = vsel %vm1133_vm4, %v4047_v23, 0 }
 0x298   : > { %v4040_v18 = vpack.c.bf16 %v953_v16, %v953_v16  ;;  %v1013_v19 = vsel %vm1008_vm3, %v4038_v15, 0 }
 0x299   : > { %3177 = vmatpush3.bf16.xpose.msra.mxu0 %v1013_v19  ;;  %v1181_v29 = vsel %vm1133_vm4, %v4052_v26, 0 }
 0x29a   : > { %v1059_v22 = vsel %vm1008_vm3, %v4040_v18, 0  ;;  %3188 = vmatprep.subr.bf16.mxu0 %v3687_v11 }
 0x29b   : > { %3183 = vmatpush3.bf16.xpose.msra.mxu1 %v1059_v22 }
 0x29c   : > { %3194 = vmatprep.subr.bf16.mxu1 %v3687_v11 }
 0x2a0   : > { %3179 = vmatmul.mubr.msk.bf16.vlgmr.msra.gmra.mrb[4].mxu0 %vm1008_vm3, %v4050_v25 }
 0x2a1   : > { %3189 = vmatpush3.bf16.msra.mxu0 %v1135_v28  ;;  %3190 = vmatprep.mubr.msk.bf16.mxu0 %vm3689_vm2, %v3687_v11 }
 0x2a2   : > { %3185 = vmatmul.mubr.msk.bf16.vlgmr.msra.gmra.mrb[4].mxu1 %vm1008_vm3, %v4054_v27  ;;  %3200 = vmatprep.subr.bf16.mxu0 %v3687_v11 }
 0x2a3   : > { %3195 = vmatpush3.bf16.msra.mxu1 %v1181_v29  ;;  %3196 = vmatprep.mubr.msk.bf16.mxu1 %vm3689_vm2, %v3687_v11 }
 0x2a4   : > { %3208 = vmatprep.subr.bf16.mxu1 %v3687_v11 }
 0x373   : > { %v1049_v30 = vpop.f32.mrb[4].mxu0 }
 0x374   : > { %v1101_v32 = vmul.f32 0.17677669, %v1049_v30  ;;  %v3180_v33 = vpop.f32.mrb[5].mxu0 }
 0x375   : > { %v1052_v34 = vpop.f32.mrb[6].mxu0  ;;  %v1095_v35 = vpop.f32.mrb[4].mxu1 }
 0x376   : > { %v1102_v36 = vmul.f32 0.17677669, %v1095_v35  ;;  %v3181_v38 = vpop.f32.mrb[7].mxu0  ;;  %v3186_v39 = vpop.f32.mrb[5].mxu1  ;;  %v1103_v40 = vadd.f32 %v1101_v32, %v4070_v31 }
 0x377   : > { %v1098_v41 = vpop.f32.mrb[6].mxu1 }
 0x378   : > { %v3187_v42 = vpop.f32.mrb[7].mxu1  ;;  %v1106_v43 = vsel %vm1105_vm5, %v1103_v40, -inf  ;;  %v1104_v44 = vadd.f32 %v1102_v36, %v4070_v31 }
 0x379   : > { %1107 = vmax.xlane.f32.xlu0 %v1106_v43 }
 0x37a   : > { %v1109_v45 = vsel %vm1105_vm5, %v1104_v44, -inf }
 0x37b   : > { %1110 = vmax.xlane.f32.xlu1 %v1109_v45 }
 0x406   : > { %v1108_v46 = vpop.xlane.xlu0 %1107 }
 0x407   : > { %v1112_v47 = vsub.f32 %v1103_v40, %v1108_v46 }
 0x408   : > { %v1111_v48 = vpop.xlane.xlu1 %1110 }
 0x409   : > { %v1114_v49 = vmul.f32 1.442695, %v1112_v47  ;;  %v1113_v50 = vsub.f32 %v1104_v44, %v1111_v48 }
 0x40b   : > { %3493 = vpow2.f32 %v1114_v49  ;;  %v1116_v51 = vmul.f32 1.442695, %v1113_v50 }
 0x40d   : > { %3495 = vpow2.f32 %v1116_v51 }
 0x415   : > { %v3494_v52 = vpop.eup %3493 }
 0x416   : > { %v1118_v53 = vsel %vm1105_vm5, %v3494_v52, 0.0 }
 0x417   : > { %v3496_v54 = vpop.eup %3495  ;;  %1119 = vadd.xlane.f32.xlu0 %v1118_v53 }
 0x418   : > { %v1121_v55 = vsel %vm1105_vm5, %v3496_v54, 0.0 }
 0x419   : > { %1122 = vadd.xlane.f32.xlu1 %v1121_v55 }
 0x42a   : > { %1338 = vrot.lane.b32.xlu1 %v4040_v18, %s3690_s20 }
 0x42d   : > { %1286 = vrot.lane.b32.xlu0 %v4038_v15, %s3690_s20 }
 0x42e   : > { %1283 = vrot.lane.b32.xlu1 %v4050_v25, %s3690_s20 }
 0x432   : > { %1335 = vrot.lane.b32.xlu1 %v4054_v27, %s3690_s20 }
 0x4a4   : > { %v1120_v56 = vpop.xlane.xlu0 %1119 }
 0x4a5   : > { %3497 = vrcp.f32 %v1120_v56 }
 0x4a6   : > { %v1123_v57 = vpop.xlane.xlu1 %1122 }
 0x4a7   : > { %3499 = vrcp.f32 %v1123_v57 }
 0x4a8   : > { %v1287_v4 = vpop.permute.xlu0 %1286 }
 0x4a9   : > { %v1292_v7 = vsel %vm1008_vm3, %v1287_v4, 0 }
 0x4aa   : > { %v1339_v8 = vpop.permute.xlu1 %1338 }
 0x4ab   : > { %v1344_v21 = vsel %vm1008_vm3, %v1339_v8, 0 }
 0x4ae   : > { %v1284_v9 = vpop.permute.xlu1 %1283 }
 0x4af   : > { %v3498_v58 = vpop.eup %3497 }
 0x4b0   : > { %v1126_v59 = vmul.f32 %v3498_v58, %v3494_v52 }
 0x4b1   : > { %v3500_v60 = vpop.eup %3499 }
 0x4b2   : > { %v1127_v1 = vmul.f32 %v3500_v60, %v3496_v54  ;;  %v1128_v3 = vpack.c.bf16 %v1126_v59, %v1126_v59  ;;  %v1336_v30 = vpop.permute.xlu1 %1335 }
 0x4b4   : > { %3191 = vmatmul.mubr.msk.bf16.vlgmr.msra.gmra.mrb[8].mxu0 %vm1105_vm5, %v1128_v3  ;;  %v1129_v5 = vpack.c.bf16 %v1127_v1, %v1127_v1 }
 0x4b5   : > { %3201 = vmatpush3.bf16.msra.mxu0 %v3401_v63  ;;  %3204 = vmatprep.mubr.msk.bf16.mxu0 %vm3689_vm2, %v3687_v11 }
 0x4b6   : > { %3197 = vmatmul.mubr.msk.bf16.vlgmr.msra.gmra.mrb[8].mxu1 %vm1105_vm5, %v1129_v5  ;;  %3202 = vmatprep.subr.bf16.mxu0 %v3687_v11 }
 0x4b7   : > { %3209 = vmatpush3.bf16.xpose.msra.mxu1 %v1292_v7  ;;  %3210 = vmatprep.mubr.msk.bf16.mxu1 %vm3689_vm2, %v3687_v11 }
 0x4b8   : > { %3220 = vmatprep.subr.bf16.mxu1 %v3687_v11 }
 0x4b9   : > { %3203 = vmatpush3.bf16.msra.mxu0 %v3402_v6  ;;  %v3403_v6 = vld [vmem:[%s3950_s18 + $0x10] sm:$0xff]  }
 0x4ba   : > { %3214 = vmatprep.subr.bf16.mxu0 %v3687_v11 }
 0x4be   : > { %3211 = vmatmul.mubr.msk.bf16.vlgmr.msra.gmra.mrb[12].mxu1 %vm1008_vm3, %v1284_v9 }
 0x4bf   : > { %3222 = vmatprep.mubr.msk.bf16.mxu1 %vm3689_vm2, %v3687_v11 }
 0x587   : > { %v1171_v10 = vpop.f32.mrb[8].mxu0 }
 0x588   : > { %v3192_v12 = vpop.f32.mrb[9].mxu0 }
 0x589   : > { %v1174_v13 = vpop.f32.mrb[10].mxu0  ;;  %v1217_v14 = vpop.f32.mrb[8].mxu1 }
 0x58a   : > { %v1223_v16 = vpack.c.bf16 %v1217_v14, %v1171_v10  ;;  %v3193_v17 = vpop.f32.mrb[11].mxu0  ;;  %v3198_v19 = vpop.f32.mrb[9].mxu1 }
 0x58b   : > { %v1220_v20 = vpop.f32.mrb[10].mxu1 }
 0x58c   : > { %v3199_v22 = vpop.f32.mrb[11].mxu1  ;;  %3205 = vmatmul.mubr.msk.bf16.vlgmr.msra.gmra.mrb[12].mxu0 %vm1008_vm3, %v1223_v16  ;;  %v3404_v16 = vld [vmem:[%s3950_s18 + $0x18] sm:$0xff]  }
 0x58d   : > { %3215 = vmatpush3.bf16.xpose.msra.mxu0 %v1344_v21  ;;  %3216 = vmatprep.mubr.msk.bf16.mxu0 %vm3689_vm2, %v3687_v11 }
 0x58e   : > { %3226 = vmatprep.subr.bf16.mxu0 %v3687_v11 }
 0x591   : > { %v1328_v24 = vpop.f32.mrb[12].mxu1 }
 0x592   : > { %v1386_v28 = vmul.f32 0.17677669, %v1328_v24  ;;  %v3212_v29 = vpop.f32.mrb[13].mxu1 }
 0x593   : > { %v1331_v32 = vpop.f32.mrb[14].mxu1 }
 0x594   : > { %v3213_v33 = vpop.f32.mrb[15].mxu1  ;;  %3217 = vmatmul.mubr.msk.bf16.vlgmr.msra.gmra.mrb[16].mxu0 %vm1008_vm3, %v1336_v30  ;;  %v1388_v34 = vadd.f32 %v1386_v28, %v4070_v31 }
 0x595   : > { %3228 = vmatprep.mubr.msk.bf16.mxu0 %vm3689_vm2, %v3687_v11 }
 0x596   : > { %v1390_v35 = vsel %vm1105_vm5, %v1388_v34, -inf }
 0x597   : > { %1391 = vmax.xlane.f32.xlu0 %v1390_v35 }
 0x624   : > { %v1392_v36 = vpop.xlane.xlu0 %1391 }
 0x625   : > { %v1396_v38 = vsub.f32 %v1388_v34, %v1392_v36 }
 0x627   : > { %v1398_v39 = vmul.f32 1.442695, %v1396_v38 }
 0x629   : > { %3501 = vpow2.f32 %v1398_v39 }
 0x633   : > { %v3502_v40 = vpop.eup %3501 }
 0x634   : > { %v1402_v41 = vsel %vm1105_vm5, %v3502_v40, 0.0 }
 0x635   : > { %1403 = vadd.xlane.f32.xlu0 %v1402_v41 }
 0x65f   : > { %v4112_v42 = vpop.f32.mrb[12].mxu0 }
 0x660   : > { %v3206_v43 = vpop.f32.mrb[13].mxu0 }
 0x661   : > { %v4114_v44 = vpop.f32.mrb[14].mxu0 }
 0x662   : > { %v3207_v45 = vpop.f32.mrb[15].mxu0 }
 0x667   : > { %v1380_v46 = vpop.f32.mrb[16].mxu0 }
 0x668   : > { %v1387_v47 = vmul.f32 0.17677669, %v1380_v46  ;;  %v3218_v48 = vpop.f32.mrb[17].mxu0 }
 0x669   : > { %v1383_v49 = vpop.f32.mrb[18].mxu0 }
 0x66a   : > { %v3219_v50 = vpop.f32.mrb[19].mxu0  ;;  %v1389_v51 = vadd.f32 %v1387_v47, %v4070_v31 }
 0x66b   : > { %v2956_v50 = vld [vmem:[%s723_s21] ss:$0 sm:$0xff] }
 0x66c   : > { %v1393_v52 = vsel %vm1105_vm5, %v1389_v51, -inf }
 0x66d   : > { %1394 = vmax.xlane.f32.xlu1 %v1393_v52 }
 0x67e   : > { %1464 = vrot.lane.b32.xlu1 %v4052_v26, %s3690_s20 }
 0x682   : > { %1573 = vrot.lane.b32.xlu1 %v4038_v15, %s3691_s17 }
 0x686   : > { %1623 = vrot.lane.b32.xlu1 %v4040_v18, %s3691_s17 }
 0x68a   : > { %1621 = vrot.lane.b32.xlu1 %v4054_v27, %s3691_s17 }
 0x6c2   : > { %v1404_v60 = vpop.xlane.xlu0 %1403 }
 0x6fa   : > { %v1395_v53 = vpop.xlane.xlu1 %1394 }
 0x6fb   : > { %v1397_v54 = vsub.f32 %v1389_v51, %v1395_v53  ;;  %v1280_v51 = vadd.f32 %v2956_v50, %v4112_v42  ;;  %v1281_v53 = vadd.f32 %v2956_v50, %v4114_v44 }
 0x6fd   : > { %v1400_v55 = vmul.f32 1.442695, %v1397_v54 }
 0x6fe   : > { %v1465_v56 = vpop.permute.xlu1 %1464 }
 0x6ff   : > { %3503 = vpow2.f32 %v1400_v55  ;;  %v1470_v57 = vsel %vm1133_vm4, %v1465_v56, 0 }
 0x700   : > { %3227 = vmatpush3.bf16.msra.mxu0 %v1470_v57  ;;  %3505 = vrcp.f32 %v1404_v60 }
 0x701   : > { %3240 = vmatprep.subr.bf16.mxu0 %v3687_v11 }
 0x702   : > { %v1574_v10 = vpop.permute.xlu1 %1573 }
 0x703   : > { %v1579_v13 = vsel %vm1008_vm3, %v1574_v10, 0 }
 0x706   : > { %v1624_v22 = vpop.permute.xlu1 %1623 }
 0x707   : > { %v1629_v32 = vsel %vm1008_vm3, %v1624_v22, 0 }
 0x709   : > { %v3504_v58 = vpop.eup %3503 }
 0x70a   : > { %v1405_v59 = vsel %vm1105_vm5, %v3504_v58, 0.0  ;;  %v3506_v63 = vpop.eup %3505  ;;  %v1622_v38 = vpop.permute.xlu1 %1621 }
 0x70b   : > { %1406 = vadd.xlane.f32.xlu0 %v1405_v59  ;;  %v1410_v3 = vmul.f32 %v3506_v63, %v3502_v40 }
 0x70d   : > { %v1412_v7 = vpack.c.bf16 %v1410_v3, %v1410_v3 }
 0x721   : > { %1415 = vrot.lane.b32.xlu0 %v4047_v23, %s3690_s20  ;;  %s4446_s20 = sld [smem:[#allocation15_spill]] }
 0x725   : > { %1571 = vrot.lane.b32.xlu0 %v4050_v25, %s3691_s17 }
 0x798   : > { %v1407_v1 = vpop.xlane.xlu0 %1406 }
 0x799   : > { %3507 = vrcp.f32 %v1407_v1 }
 0x79c   : > { %v1416_v4 = vpop.permute.xlu0 %1415 }
 0x79d   : > { %v1421_v5 = vsel %vm1133_vm4, %v1416_v4, 0 }
 0x79e   : > { %3221 = vmatpush3.bf16.msra.mxu1 %v1421_v5 }
 0x79f   : > { %3232 = vmatprep.subr.bf16.mxu1 %v3687_v11 }
 0x7a0   : > { %v1572_v14 = vpop.permute.xlu0 %1571 }
 0x7a1   : > { %3223 = vmatmul.mubr.msk.bf16.vlgmr.msra.gmra.mrb[16].mxu1 %vm1105_vm5, %v1412_v7 }
 0x7a2   : > { %3233 = vmatpush3.bf16.msra.mxu1 %v3403_v6  ;;  %3236 = vmatprep.mubr.msk.bf16.mxu1 %vm3689_vm2, %v3687_v11 }
 0x7a3   : > { %v3508_v8 = vpop.eup %3507  ;;  %3234 = vmatprep.subr.bf16.mxu1 %v3687_v11 }
 0x7a4   : > { %v1411_v9 = vmul.f32 %v3508_v8, %v3504_v58 }
 0x7a6   : > { %v1413_v12 = vpack.c.bf16 %v1411_v9, %v1411_v9  ;;  %3235 = vmatpush3.bf16.msra.mxu1 %v3404_v16  ;;  %v3405_v16 = vld [vmem:[%s3950_s18 + $0x20] sm:$0xff]  }
 0x7a7   : > { %3246 = vmatprep.subr.bf16.mxu1 %v3687_v11 }
 0x7a8   : > { %3229 = vmatmul.mubr.msk.bf16.vlgmr.msra.gmra.mrb[20].mxu0 %vm1105_vm5, %v1413_v12 }
 0x7a9   : > { %3241 = vmatpush3.bf16.xpose.msra.mxu0 %v1579_v13  ;;  %3242 = vmatprep.mubr.msk.bf16.mxu0 %vm3689_vm2, %v3687_v11 }
 0x7aa   : > { %3252 = vmatprep.subr.bf16.mxu0 %v3687_v11 }
 0x7b0   : > { %3243 = vmatmul.mubr.msk.bf16.vlgmr.msra.gmra.mrb[24].mxu0 %vm1008_vm3, %v1572_v14 }
 0x7b1   : > { %3254 = vmatprep.mubr.msk.bf16.mxu0 %vm3689_vm2, %v3687_v11 }
 0x874   : > { %v1457_v17 = vpop.f32.mrb[16].mxu1 }
 0x875   : > { %v3224_v19 = vpop.f32.mrb[17].mxu1 }
 0x876   : > { %v1460_v20 = vpop.f32.mrb[18].mxu1 }
 0x877   : > { %v3225_v21 = vpop.f32.mrb[19].mxu1 }
 0x87b   : > { %v1506_v24 = vpop.f32.mrb[20].mxu0 }
 0x87c   : > { %v1512_v28 = vpack.c.bf16 %v1506_v24, %v1457_v17  ;;  %v3230_v29 = vpop.f32.mrb[21].mxu0 }
 0x87d   : > { %v1509_v30 = vpop.f32.mrb[22].mxu0 }
 0x87e   : > { %v3231_v33 = vpop.f32.mrb[23].mxu0  ;;  %3237 = vmatmul.mubr.msk.bf16.vlgmr.msra.gmra.mrb[20].mxu1 %vm1008_vm3, %v1512_v28  ;;  %v3406_v28 = vld [vmem:[%s3950_s18 + $0x28] sm:$0xff]  }
 0x87f   : > { %3247 = vmatpush3.bf16.xpose.msra.mxu1 %v1629_v32  ;;  %3248 = vmatprep.mubr.msk.bf16.mxu1 %vm3689_vm2, %v3687_v11 }
 0x880   : > { %3258 = vmatprep.subr.bf16.mxu1 %v3687_v11 }
 0x883   : > { %v1615_v34 = vpop.f32.mrb[24].mxu0 }
 0x884   : > { %v1671_v35 = vmul.f32 0.17677669, %v1615_v34  ;;  %v3244_v36 = vpop.f32.mrb[25].mxu0 }
 0x885   : > { %v1618_v39 = vpop.f32.mrb[26].mxu0 }
 0x886   : > { %v3245_v40 = vpop.f32.mrb[27].mxu0  ;;  %3249 = vmatmul.mubr.msk.bf16.vlgmr.msra.gmra.mrb[24].mxu1 %vm1008_vm3, %v1622_v38  ;;  %v1673_v41 = vadd.f32 %v1671_v35, %v4070_v31 }
 0x887   : > { %3260 = vmatprep.mubr.msk.bf16.mxu1 %vm3689_vm2, %v3687_v11 }
 0x888   : > { %v1675_v43 = vsel %vm1105_vm5, %v1673_v41, -inf }
 0x889   : > { %1676 = vmax.xlane.f32.xlu0 %v1675_v43 }
 0x916   : > { %v1677_v45 = vpop.xlane.xlu0 %1676 }
 0x917   : > { %v1681_v46 = vsub.f32 %v1673_v41, %v1677_v45 }
 0x919   : > { %v1683_v47 = vmul.f32 1.442695, %v1681_v46 }
 0x91b   : > { %3509 = vpow2.f32 %v1683_v47 }
 0x925   : > { %v3510_v48 = vpop.eup %3509 }
 0x926   : > { %v1687_v49 = vsel %vm1105_vm5, %v3510_v48, 0.0 }
 0x927   : > { %1688 = vadd.xlane.f32.xlu0 %v1687_v49 }
 0x951   : > { %v1562_v52 = vpop.f32.mrb[20].mxu1 }
 0x952   : > { %v4167_v54 = vadd.f32 %v1562_v52, %v1280_v51  ;;  %v3238_v55 = vpop.f32.mrb[21].mxu1 }
 0x953   : > { %v1565_v56 = vpop.f32.mrb[22].mxu1 }
 0x954   : > { %v4169_v57 = vadd.f32 %v1565_v56, %v1281_v53  ;;  %v3239_v58 = vpop.f32.mrb[23].mxu1 }
 0x959   : > { %v1665_v59 = vpop.f32.mrb[24].mxu1 }
 0x95a   : > { %v1672_v60 = vmul.f32 0.17677669, %v1665_v59  ;;  %v3250_v63 = vpop.f32.mrb[25].mxu1 }
 0x95b   : > { %v1668_v1 = vpop.f32.mrb[26].mxu1 }
 0x95c   : > { %v3251_v3 = vpop.f32.mrb[27].mxu1  ;;  %v1674_v4 = vadd.f32 %v1672_v60, %v4070_v31 }
 0x95e   : > { %v1678_v5 = vsel %vm1105_vm5, %v1674_v4, -inf }
 0x95f   : > { %1679 = vmax.xlane.f32.xlu1 %v1678_v5 }
 0x970   : > { %1747 = vrot.lane.b32.xlu1 %v4052_v26, %s3691_s17 }
 0x974   : > { %1856 = vrot.lane.b32.xlu1 %v4038_v15, %s3692_s24 }
 0x978   : > { %1906 = vrot.lane.b32.xlu1 %v4040_v18, %s3692_s24 }
 0x97c   : > { %1904 = vrot.lane.b32.xlu1 %v4054_v27, %s3692_s24 }
 0x9b4   : > { %v1689_v18 = vpop.xlane.xlu0 %1688 }
 0x9ec   : > { %v1680_v42 = vpop.xlane.xlu1 %1679 }
 0x9ed   : > { %v1682_v44 = vsub.f32 %v1674_v4, %v1680_v42 }
 0x9ef   : > { %v1685_v6 = vmul.f32 1.442695, %v1682_v44 }
 0x9f0   : > { %v1748_v7 = vpop.permute.xlu1 %1747 }
 0x9f1   : > { %3511 = vpow2.f32 %v1685_v6  ;;  %v1753_v8 = vsel %vm1133_vm4, %v1748_v7, 0 }
 0x9f2   : > { %3259 = vmatpush3.bf16.msra.mxu1 %v1753_v8  ;;  %3513 = vrcp.f32 %v1689_v18 }
 0x9f3   : > { %3272 = vmatprep.subr.bf16.mxu1 %v3687_v11 }
 0x9f4   : > { %v1857_v20 = vpop.permute.xlu1 %1856 }
 0x9f5   : > { %v1862_v22 = vsel %vm1008_vm3, %v1857_v20, 0 }
 0x9f8   : > { %v1907_v34 = vpop.permute.xlu1 %1906 }
 0x9f9   : > { %v1912_v40 = vsel %vm1008_vm3, %v1907_v34, 0 }
 0x9fb   : > { %v3512_v9 = vpop.eup %3511 }
 0x9fc   : > { %v1690_v15 = vsel %vm1105_vm5, %v3512_v9, 0.0  ;;  %v3514_v27 = vpop.eup %3513  ;;  %v1905_v47 = vpop.permute.xlu1 %1904 }
 0x9fd   : > { %1691 = vadd.xlane.f32.xlu0 %v1690_v15  ;;  %v1695_v12 = vmul.f32 %v3514_v27, %v3510_v48 }
 0x9ff   : > { %v1697_v17 = vpack.c.bf16 %v1695_v12, %v1695_v12 }
 0xa13   : > { %1699 = vrot.lane.b32.xlu0 %v4047_v23, %s3691_s17  ;;  %s728_s17 = scalar_lea.vmem %s4446_s20, %s727_s28 }
 0xa17   : > { %1854 = vrot.lane.b32.xlu0 %v4050_v25, %s3692_s24 }
 0xa8a   : > { %v1692_v10 = vpop.xlane.xlu0 %1691 }
 0xa8b   : > { %3515 = vrcp.f32 %v1692_v10 }
 0xa8e   : > { %v1700_v13 = vpop.permute.xlu0 %1699 }
 0xa8f   : > { %v1705_v14 = vsel %vm1133_vm4, %v1700_v13, 0 }
 0xa90   : > { %3253 = vmatpush3.bf16.msra.mxu0 %v1705_v14 }
 0xa91   : > { %3264 = vmatprep.subr.bf16.mxu0 %v3687_v11 }
 0xa92   : > { %v1855_v24 = vpop.permute.xlu0 %1854 }
 0xa93   : > { %3255 = vmatmul.mubr.msk.bf16.vlgmr.msra.gmra.mrb[28].mxu0 %vm1105_vm5, %v1697_v17 }
 0xa94   : > { %3265 = vmatpush3.bf16.msra.mxu0 %v3405_v16  ;;  %3268 = vmatprep.mubr.msk.bf16.mxu0 %vm3689_vm2, %v3687_v11 }
 0xa95   : > { %v3516_v25 = vpop.eup %3515  ;;  %3266 = vmatprep.subr.bf16.mxu0 %v3687_v11 }
 0xa96   : > { %v1696_v19 = vmul.f32 %v3516_v25, %v3512_v9 }
 0xa98   : > { %v1698_v21 = vpack.c.bf16 %v1696_v19, %v1696_v19  ;;  %3267 = vmatpush3.bf16.msra.mxu0 %v3406_v28 }
 0xa99   : > { %3278 = vmatprep.subr.bf16.mxu0 %v3687_v11 }
 0xa9a   : > { %3261 = vmatmul.mubr.msk.bf16.vlgmr.msra.gmra.mrb[28].mxu1 %vm1105_vm5, %v1698_v21  ;;  %v3407_v21 = vld [vmem:[%s3950_s18 + $0x30] sm:$0xff]  }
 0xa9b   : > { %3273 = vmatpush3.bf16.xpose.msra.mxu1 %v1862_v22  ;;  %3274 = vmatprep.mubr.msk.bf16.mxu1 %vm3689_vm2, %v3687_v11  ;;  %v3408_v22 = vld [vmem:[%s3950_s18 + $0x38] sm:$0xff]  }
 0xa9c   : > { %3284 = vmatprep.subr.bf16.mxu1 %v3687_v11 }
 0xaa2   : > { %3275 = vmatmul.mubr.msk.bf16.vlgmr.msra.gmra.mrb[32].mxu1 %vm1008_vm3, %v1855_v24 }
 0xaa3   : > { %3286 = vmatprep.mubr.msk.bf16.mxu1 %vm3689_vm2, %v3687_v11 }
 0xb66   : > { %v1741_v29 = vpop.f32.mrb[28].mxu0 }
 0xb67   : > { %v3256_v30 = vpop.f32.mrb[29].mxu0 }
 0xb68   : > { %v1744_v32 = vpop.f32.mrb[30].mxu0 }
 0xb69   : > { %v3257_v33 = vpop.f32.mrb[31].mxu0 }
 0xb6d   : > { %v1789_v35 = vpop.f32.mrb[28].mxu1 }
 0xb6e   : > { %v1795_v36 = vpack.c.bf16 %v1789_v35, %v1741_v29  ;;  %v3262_v38 = vpop.f32.mrb[29].mxu1 }
 0xb6f   : > { %v1792_v39 = vpop.f32.mrb[30].mxu1 }
 0xb70   : > { %v3263_v41 = vpop.f32.mrb[31].mxu1  ;;  %3269 = vmatmul.mubr.msk.bf16.vlgmr.msra.gmra.mrb[32].mxu0 %vm1008_vm3, %v1795_v36 }
 0xb71   : > { %3279 = vmatpush3.bf16.xpose.msra.mxu0 %v1912_v40  ;;  %3280 = vmatprep.mubr.msk.bf16.mxu0 %vm3689_vm2, %v3687_v11  ;;  %v3545_v41 = vld [vmem:[#allocation2] sm:$0xff] }
 0xb72   : > { %3290 = vmatprep.subr.bf16.mxu0 %v3687_v11 }
 0xb75   : > { %v1898_v43 = vpop.f32.mrb[32].mxu1 }
 0xb76   : > { %v1954_v45 = vmul.f32 0.17677669, %v1898_v43  ;;  %v3276_v46 = vpop.f32.mrb[33].mxu1 }
 0xb77   : > { %v1901_v48 = vpop.f32.mrb[34].mxu1 }
 0xb78   : > { %v3277_v49 = vpop.f32.mrb[35].mxu1  ;;  %3281 = vmatmul.mubr.msk.bf16.vlgmr.msra.gmra.mrb[36].mxu0 %vm1008_vm3, %v1905_v47  ;;  %v1956_v50 = vadd.f32 %v1954_v45, %v4070_v31  ;;  %v3546_v47 = vld [vmem:[#allocation2 + $0x8] sm:$0xff] }
 0xb79   : > { %3292 = vmatprep.mubr.msk.bf16.mxu0 %vm3689_vm2, %v3687_v11  ;;  %v3411_v49 = vld [vmem:[%s3939_s16 + $0x4] ss:$16 sps:$4 sm:$0xff]  }
 0xb7a   : > { %v1958_v51 = vsel %vm1105_vm5, %v1956_v50, -inf }
 0xb7b   : > { %1959 = vmax.xlane.f32.xlu0 %v1958_v51  ;;  %v3414_v51 = vld [vmem:[%s3939_s16 + $0xc] ss:$16 sps:$4 sm:$0xff]  }
 0xc08   : > { %v1960_v52 = vpop.xlane.xlu0 %1959 }
 0xc09   : > { %v1964_v53 = vsub.f32 %v1956_v50, %v1960_v52  ;;  %v3412_v50 = vld [vmem:[%s3939_s16 + $0x8] ss:$16 sps:$4 sm:$0xff]   ;;  %v3417_v52 = vld [vmem:[%s3939_s16 + $0x24] ss:$16 sps:$4 sm:$0xff]  }
 0xc0b   : > { %v1966_v55 = vmul.f32 1.442695, %v1964_v53  ;;  %v3420_v53 = vld [vmem:[%s3939_s16 + $0x2c] ss:$16 sps:$4 sm:$0xff]  }
 0xc0d   : > { %3517 = vpow2.f32 %v1966_v55  ;;  %v3415_v55 = vld [vmem:[%s3939_s16 + $0x20] ss:$16 sps:$4 sm:$0xff]  }
 0xc17   : > { %v3518_v56 = vpop.eup %3517 }
 0xc18   : > { %v1970_v58 = vsel %vm1105_vm5, %v3518_v56, 0.0 }
 0xc19   : > { %1971 = vadd.xlane.f32.xlu0 %v1970_v58 }
 0xc43   : > { %v1845_v59 = vpop.f32.mrb[32].mxu0 }
 0xc44   : > { %v1852_v60 = vadd.f32 %v1845_v59, %v4167_v54  ;;  %v3270_v63 = vpop.f32.mrb[33].mxu0 }
 0xc45   : > { %v1848_v1 = vpop.f32.mrb[34].mxu0 }
 0xc46   : > { %v1853_v3 = vadd.f32 %v1848_v1, %v4169_v57  ;;  %v3271_v4 = vpop.f32.mrb[35].mxu0 }
 0xc4b   : > { %v1948_v5 = vpop.f32.mrb[36].mxu0 }
 0xc4c   : > { %v1955_v42 = vmul.f32 0.17677669, %v1948_v5  ;;  %v3282_v44 = vpop.f32.mrb[37].mxu0 }
 0xc4d   : > { %v1951_v6 = vpop.f32.mrb[38].mxu0  ;;  %v3426_v44 = vld [vmem:[%s3939_s16 + $0x4c] ss:$16 sps:$4 sm:$0xff]  }
 0xc4e   : > { %v3283_v7 = vpop.f32.mrb[39].mxu0  ;;  %v1957_v8 = vadd.f32 %v1955_v42, %v4070_v31  ;;  %v3423_v42 = vld [vmem:[%s3939_s16 + $0x44] ss:$16 sps:$4 sm:$0xff]   ;;  %v3421_v6 = vld [vmem:[%s3939_s16 + $0x40] ss:$16 sps:$4 sm:$0xff]  }
 0xc4f   : > { %v3424_v7 = vld [vmem:[%s3939_s16 + $0x48] ss:$16 sps:$4 sm:$0xff]  }
 0xc50   : > { %v1961_v9 = vsel %vm1105_vm5, %v1957_v8, -inf }
 0xc51   : > { %1962 = vmax.xlane.f32.xlu1 %v1961_v9  ;;  %v3432_v9 = vld [vmem:[%s3939_s16 + $0x6c] ss:$16 sps:$4 sm:$0xff]  }
 0xc62   : > { %2030 = vrot.lane.b32.xlu1 %v4052_v26, %s3692_s24 }
 0xca6   : > { %v1972_v31 = vpop.xlane.xlu0 %1971 }
 0xcde   : > { %v1963_v15 = vpop.xlane.xlu1 %1962 }
 0xcdf   : > { %v1965_v54 = vsub.f32 %v1957_v8, %v1963_v15  ;;  %v3429_v8 = vld [vmem:[%s3939_s16 + $0x64] ss:$16 sps:$4 sm:$0xff]   ;;  %v3427_v15 = vld [vmem:[%s3939_s16 + $0x60] ss:$16 sps:$4 sm:$0xff]  }
 0xce1   : > { %v1968_v18 = vmul.f32 1.442695, %v1965_v54  ;;  %v3430_v54 = vld [vmem:[%s3939_s16 + $0x68] ss:$16 sps:$4 sm:$0xff]  }
 0xce2   : > { %v2031_v27 = vpop.permute.xlu1 %2030 }
 0xce3   : > { %3519 = vpow2.f32 %v1968_v18  ;;  %v2036_v57 = vsel %vm1133_vm4, %v2031_v27, 0  ;;  %v3435_v18 = vld [vmem:[%s3939_s16 + $0x84] ss:$16 sps:$4 sm:$0xff]   ;;  %v3438_v27 = vld [vmem:[%s3939_s16 + $0x8c] ss:$16 sps:$4 sm:$0xff]  }
 0xce4   : > { %3291 = vmatpush3.bf16.msra.mxu0 %v2036_v57  ;;  %3521 = vrcp.f32 %v1972_v31  ;;  %v3433_v57 = vld [vmem:[%s3939_s16 + $0x80] ss:$16 sps:$4 sm:$0xff]   ;;  %v3444_v31 = vld [vmem:[%s3939_s16 + $0xac] ss:$16 sps:$4 sm:$0xff]  }
 0xce5   : > { %2355 = vmatprep.subr.bf16.mxu0 %v3411_v49  ;;  %v3459_v49 = vld [vmem:[%s3952_s22] sm:$0xff]  }
 0xced   : > { %v3520_v10 = vpop.eup %3519 }
 0xcee   : > { %v1973_v12 = vsel %vm1105_vm5, %v3520_v10, 0.0  ;;  %v3522_v13 = vpop.eup %3521 }
 0xcef   : > { %1974 = vadd.xlane.f32.xlu0 %v1973_v12  ;;  %v1978_v14 = vmul.f32 %v3522_v13, %v3518_v56  ;;  %v3418_v56 = vld [vmem:[%s3939_s16 + $0x28] ss:$16 sps:$4 sm:$0xff]   ;;  %v3441_v12 = vld [vmem:[%s3939_s16 + $0xa4] ss:$16 sps:$4 sm:$0xff]   ;;  %v3439_v13 = vld [vmem:[%s3939_s16 + $0xa0] ss:$16 sps:$4 sm:$0xff]  }
 0xcf1   : > { %v1980_v25 = vpack.c.bf16 %v1978_v14, %v1978_v14  ;;  %v3447_v14 = vld [vmem:[%s3939_s16 + $0xc4] ss:$16 sps:$4 sm:$0xff]  }
 0xd05   : > { %1982 = vrot.lane.b32.xlu0 %v4047_v23, %s3692_s24  ;;  %s4448_s24 = sld [smem:[#allocation17_spill]] (!%p3052_p7) }
 0xd7c   : > { %v1975_v26 = vpop.xlane.xlu0 %1974 }
 0xd7d   : > { %3523 = vrcp.f32 %v1975_v26  ;;  %v3442_v26 = vld [vmem:[%s3939_s16 + $0xa8] ss:$16 sps:$4 sm:$0xff]  }
 0xd80   : > { %v1983_v16 = vpop.permute.xlu0 %1982 }
 0xd81   : > { %v1988_v17 = vsel %vm1133_vm4, %v1983_v16, 0  ;;  %v3450_v16 = vld [vmem:[%s3939_s16 + $0xcc] ss:$16 sps:$4 sm:$0xff]  }
 0xd82   : > { %3285 = vmatpush3.bf16.msra.mxu1 %v1988_v17  ;;  %v3445_v17 = vld [vmem:[%s3939_s16 + $0xc0] ss:$16 sps:$4 sm:$0xff]  }
 0xd83   : > { %3296 = vmatprep.subr.bf16.mxu1 %v3687_v11 }
 0xd85   : > { %3287 = vmatmul.mubr.msk.bf16.vlgmr.msra.gmra.mrb[36].mxu1 %vm1105_vm5, %v1980_v25  ;;  %v3448_v25 = vld [vmem:[%s3939_s16 + $0xc8] ss:$16 sps:$4 sm:$0xff]  }
 0xd86   : > { %3300 = vmatprep.mubr.msk.bf16.mxu1 %vm3689_vm2, %v3687_v11  ;;  %3297 = vmatpush3.bf16.msra.mxu1 %v3407_v21  ;;  %v3454_v21 = vld [vmem:[%s3939_s16 + $0xe8] ss:$16 sps:$4 sm:$0xff]  }
 0xd87   : > { %v3524_v23 = vpop.eup %3523  ;;  %3298 = vmatprep.subr.bf16.mxu1 %v3687_v11 }
 0xd88   : > { %v1979_v19 = vmul.f32 %v3524_v23, %v3520_v10  ;;  %v3436_v10 = vld [vmem:[%s3939_s16 + $0x88] ss:$16 sps:$4 sm:$0xff]   ;;  %v3453_v23 = vld [vmem:[%s3939_s16 + $0xe4] ss:$16 sps:$4 sm:$0xff]  }
 0xd8a   : > { %v1981_v20 = vpack.c.bf16 %v1979_v19, %v1979_v19  ;;  %3299 = vmatpush3.bf16.msra.mxu1 %v3408_v22  ;;  %v3456_v19 = vld [vmem:[%s3939_s16 + $0xec] ss:$16 sps:$4 sm:$0xff]  }
 0xd8b   : > { %2398 = vmatprep.subr.bf16.mxu1 %v3414_v51  ;;  %v3461_v51 = vld [vmem:[%s3952_s22 + $0x48] sm:$0xff]  }
 0xd8c   : > { %3293 = vmatmul.mubr.msk.bf16.vlgmr.msra.gmra.mrb[40].mxu0 %vm1105_vm5, %v1981_v20  ;;  %v3451_v20 = vld [vmem:[%s3939_s16 + $0xe0] ss:$16 sps:$4 sm:$0xff]  }
 0xd8d   : > { %2387 = vmatprep.mubr.bf16.mxu0 %v3688_v37 }
 0xe58   : > { %v2024_v24 = vpop.f32.mrb[36].mxu1 }
 0xe59   : > { %v3288_v28 = vpop.f32.mrb[37].mxu1 }
 0xe5a   : > { %v2027_v29 = vpop.f32.mrb[38].mxu1 }
 0xe5b   : > { %v3289_v30 = vpop.f32.mrb[39].mxu1 }
 0xe5f   : > { %v2072_v32 = vpop.f32.mrb[40].mxu0 }
 0xe60   : > { %v2078_v33 = vpack.c.bf16 %v2072_v32, %v2024_v24  ;;  %v3294_v34 = vpop.f32.mrb[41].mxu0 }
 0xe61   : > { %v2075_v35 = vpop.f32.mrb[42].mxu0  ;;  %v2985_v34 = vld [vmem:[%s710_s12] ss:$0 sm:$0xff] }
 0xe62   : > { %v3295_v36 = vpop.f32.mrb[43].mxu0  ;;  %3301 = vmatmul.mubr.msk.bf16.vlgmr.msra.gmra.mrb[40].mxu1 %vm1008_vm3, %v2078_v33 }
 0xe63   : > { %2430 = vmatprep.mubr.bf16.mxu1 %v3688_v37  ;;  %v3409_v37 = vld [vmem:[%s3939_s16] ss:$16 sps:$4 sm:$0xff]   ;;  %2399 = vmatpush1.bf16.msra.mxu1 %v3412_v50 }
 0xe64   : > { %2356 = vmatpush1.bf16.msra.mxu0 %v3409_v37  ;;  %2400 = vmatprep.subr.bf16.mxu1 %v3420_v53  ;;  %v3458_v37 = vld [vmem:[%s3952_s22 + $0xc0] sm:$0xff]   ;;  %v3463_v53 = vld [vmem:[%s3952_s22 + $0x8] sm:$0xff]  }
 0xe65   : > { %2357 = vmatprep.subr.bf16.mxu0 %v3417_v52  ;;  %v3460_v50 = vld [vmem:[%s3952_s22 + $0x80] sm:$0xff]   ;;  %v3462_v52 = vld [vmem:[%s3952_s22 + $0xc8] sm:$0xff]  }
 0xe67   : > { %2401 = vmatpush1.bf16.msra.mxu1 %v3418_v56  ;;  %v3465_v56 = vld [vmem:[%s3952_s22 + $0x50] sm:$0xff]  }
 0xe68   : > { %2358 = vmatpush1.bf16.msra.mxu0 %v3415_v55  ;;  %2402 = vmatprep.subr.bf16.mxu1 %v3426_v44  ;;  %v3464_v55 = vld [vmem:[%s3952_s22 + $0x88] sm:$0xff]   ;;  %v3475_v44 = vld [vmem:[%s3952_s22 + $0x20] sm:$0xff]  }
 0xe69   : > { %2359 = vmatprep.subr.bf16.mxu0 %v3423_v42  ;;  %v3474_v42 = vld [vmem:[%s3952_s22 + $0xe0] sm:$0xff]  }
 0xe6b   : > { %2403 = vmatpush1.bf16.msra.mxu1 %v3424_v7  ;;  %v3477_v7 = vld [vmem:[%s3952_s22 + $0x68] sm:$0xff]  }
 0xe6c   : > { %2360 = vmatpush1.bf16.msra.mxu0 %v3421_v6  ;;  %2404 = vmatprep.subr.bf16.mxu1 %v3432_v9  ;;  %v3476_v6 = vld [vmem:[%s3952_s22 + $0xa0] sm:$0xff]   ;;  %v3479_v9 = vld [vmem:[%s3952_s22 + $0x28] sm:$0xff]  }
 0xe6d   : > { %2361 = vmatprep.subr.bf16.mxu0 %v3429_v8  ;;  %v3478_v8 = vld [vmem:[%s3952_s22 + $0xe8] sm:$0xff]  }
 0xe6f   : > { %2405 = vmatpush1.bf16.msra.mxu1 %v3430_v54  ;;  %v3481_v54 = vld [vmem:[%s3952_s22 + $0x70] sm:$0xff]  }
 0xe70   : > { %2362 = vmatpush1.bf16.msra.mxu0 %v3427_v15  ;;  %2406 = vmatprep.subr.bf16.mxu1 %v3438_v27  ;;  %v3480_v15 = vld [vmem:[%s3952_s22 + $0xa8] sm:$0xff]   ;;  %v3483_v27 = vld [vmem:[%s3952_s22 + $0x30] sm:$0xff]  }
 0xe71   : > { %2363 = vmatprep.subr.bf16.mxu0 %v3435_v18  ;;  %v3482_v18 = vld [vmem:[%s3952_s22 + $0xf0] sm:$0xff]  }
 0xe73   : > { %2407 = vmatpush1.bf16.msra.mxu1 %v3436_v10  ;;  %v3485_v10 = vld [vmem:[%s3952_s22 + $0x78] sm:$0xff]  }
 0xe74   : > { %2364 = vmatpush1.bf16.msra.mxu0 %v3433_v57  ;;  %2408 = vmatprep.subr.bf16.mxu1 %v3444_v31  ;;  %v3484_v57 = vld [vmem:[%s3952_s22 + $0xb0] sm:$0xff]   ;;  %v3487_v31 = vld [vmem:[%s3952_s22 + $0x38] sm:$0xff]  }
 0xe75   : > { %2365 = vmatprep.subr.bf16.mxu0 %v3441_v12  ;;  %v3486_v12 = vld [vmem:[%s3952_s22 + $0xf8] sm:$0xff]  }
 0xe77   : > { %2409 = vmatpush1.bf16.msra.mxu1 %v3442_v26  ;;  %v729_v26 = vld [vmem:[%s728_s17] ss:$2 sm:$0xf] }
 0xe78   : > { %2366 = vmatpush1.bf16.msra.mxu0 %v3439_v13  ;;  %2410 = vmatprep.subr.bf16.mxu1 %v3450_v16  ;;  %v3488_v13 = vld [vmem:[%s3952_s22 + $0xb8] sm:$0xff]   ;;  %v2178_v16 = vrot.slane %v729_v26, %v771_v2 }
 0xe79   : > { %2367 = vmatprep.subr.bf16.mxu0 %v3447_v14  ;;  %v2189_v14 = vsub.s32 3, %v4024_v61 }
 0xe7b   : > { %2411 = vmatpush1.bf16.msra.mxu1 %v3448_v25  ;;  %v2182_v25 = vrot.slane %v729_v26, %v775_v62 }
 0xe7c   : > { %2368 = vmatpush1.bf16.msra.mxu0 %v3445_v17  ;;  %2412 = vmatprep.subr.bf16.mxu1 %v3456_v19  ;;  %v2186_v17 = vrot.slane %v729_v26, %v779_v0 }
 0xe7d   : > { %2369 = vmatprep.subr.bf16.mxu0 %v3453_v23  ;;  %v2190_v23 = vrot.slane %v729_v26, %v2189_v14 }
 0xe7f   : > { %2413 = vmatpush1.bf16.msra.mxu1 %v3454_v21 }
 0xe80   : > { %2370 = vmatpush1.bf16.msra.mxu0 %v3451_v20  ;;  %3134 = vmatprep.subr.bf16.mxu1 %v3458_v37 }
 0xf35   : > { %v2128_v11 = vpop.f32.mrb[40].mxu1 }
 0xf36   : > { %v2135_v38 = vadd.f32 %v2128_v11, %v1852_v60  ;;  %v3302_v39 = vpop.f32.mrb[41].mxu1 }
 0xf37   : > { %v2131_v40 = vpop.f32.mrb[42].mxu1  ;;  %v2986_v39 = vld [vmem:[%s712_s19] ss:$0 sm:$0xff] }
 0xf38   : > { %v4238_v43 = vadd.f32 %v3545_v41, %v2135_v38  ;;  %v2136_v45 = vadd.f32 %v2131_v40, %v1853_v3  ;;  %v3303_v46 = vpop.f32.mrb[43].mxu1 }
 0xf3a   : > { %v4240_v48 = vadd.f32 %v3546_v47, %v2136_v45  ;;  %2139 = vadd.xlane.f32.xlu1 %v4238_v43  ;;  %v3457_v47 = vld [vmem:[%s3952_s22 + $0x40] sm:$0xff]  }
 0xf3b   : > { %3112 = vmatprep.subr.bf16.mxu0 %v3457_v47 }
 0xf3c   : > { %2141 = vadd.xlane.f32.xlu0 %v4240_v48 }
 0xfc7   : > { %v2140_v58 = vpop.xlane.xlu1 %2139 }
 0xfc8   : > { %v2143_v59 = vmul.f32 0.0078125, %v2140_v58  ;;  %v3466_v58 = vld [vmem:[%s3952_s22 + $0xd0] sm:$0xff]  }
 0xfc9   : > { %v2142_v60 = vpop.xlane.xlu0 %2141 }
 0xfca   : > { %v4253_v63 = vsub.f32 %v4238_v43, %v2143_v59  ;;  %v2144_v1 = vmul.f32 0.0078125, %v2142_v60  ;;  %v3467_v59 = vld [vmem:[%s3952_s22 + $0x10] sm:$0xff]  }
 0xfcb   : > { %v3468_v60 = vld [vmem:[%s3952_s22 + $0x90] sm:$0xff]  }
 0xfcc   : > { %v4256_v3 = vsub.f32 %v4240_v48, %v2144_v1  ;;  %v2147_v4 = vmul.f32 %v4253_v63, %v4253_v63  ;;  %v3470_v1 = vld [vmem:[%s3952_s22 + $0xd8] sm:$0xff]  }
 0xfce   : > { %2149 = vadd.xlane.f32.xlu0 %v2147_v4  ;;  %v2148_v5 = vmul.f32 %v4256_v3, %v4256_v3  ;;  %v3472_v4 = vld [vmem:[%s3952_s22 + $0x98] sm:$0xff]  }
 0xfd0   : > { %2151 = vadd.xlane.f32.xlu1 %v2148_v5  ;;  %v3473_v5 = vld [vmem:[%s3952_s22 + $0x60] sm:$0xff]  }
0x105b   : > { %v2150_v22 = vpop.xlane.xlu0 %2149 }
0x105c   : > { %v2153_v24 = vmul.f32 0.0078125, %v2150_v22 }
0x105d   : > { %v2152_v28 = vpop.xlane.xlu1 %2151 }
0x105e   : > { %v2155_v29 = vadd.f32 1e-05, %v2153_v24  ;;  %v2154_v30 = vmul.f32 0.0078125, %v2152_v28 }
0x1060   : > { %3525 = vrsqrt.f32 %v2155_v29  ;;  %v2156_v32 = vadd.f32 1e-05, %v2154_v30 }
0x1062   : > { %3527 = vrsqrt.f32 %v2156_v32 }
0x106a   : > { %v3526_v33 = vpop.eup %3525 }
0x106b   : > { %v2159_v35 = vmul.f32 %v3526_v33, %v4253_v63  ;;  %v3469_v63 = vld [vmem:[%s3952_s22 + $0x58] sm:$0xff]  }
0x106c   : > { %v3528_v36 = vpop.eup %3527 }
0x106d   : > { %v2160_v11 = vmul.f32 %v3528_v36, %v4256_v3  ;;  %v2165_v38 = vmul.f32 %v2985_v34, %v2159_v35  ;;  %v3471_v3 = vld [vmem:[%s3952_s22 + $0x18] sm:$0xff]  }
0x106f   : > { %v2166_v40 = vmul.f32 %v2985_v34, %v2160_v11  ;;  %v2171_v41 = vadd.f32 %v2986_v39, %v2165_v38 }
0x1071   : > { %v2172_v45 = vadd.f32 %v2986_v39, %v2166_v40 }
0x1073   : > { %v2173_v46 = vpack.c.bf16 %v2172_v45, %v2171_v41 }
0x1075   : > { %2388 = vmatmul.mubr.bf16.vlgmr.msra.gmra.mrb[44].mxu0 %v2173_v46  ;;  %2431 = vmatmul.mubr.bf16.vlgmr.msra.gmra.mrb[44].mxu1 %v2173_v46 }
0x1076   : > { %3113 = vmatpush3.bf16.msra.mxu0 %v3459_v49  ;;  %3135 = vmatpush3.bf16.msra.mxu1 %v3460_v50 }
0x1077   : > { %3114 = vmatprep.subr.bf16.mxu0 %v3461_v51  ;;  %3136 = vmatprep.subr.bf16.mxu1 %v3462_v52 }
0x107a   : > { %3115 = vmatpush3.bf16.msra.mxu0 %v3463_v53  ;;  %3137 = vmatpush3.bf16.msra.mxu1 %v3464_v55 }
0x107b   : > { %3116 = vmatprep.subr.bf16.mxu0 %v3465_v56  ;;  %3138 = vmatprep.subr.bf16.mxu1 %v3466_v58 }
0x107e   : > { %3117 = vmatpush3.bf16.msra.mxu0 %v3467_v59  ;;  %3139 = vmatpush3.bf16.msra.mxu1 %v3468_v60 }
0x107f   : > { %3118 = vmatprep.subr.bf16.mxu0 %v3469_v63  ;;  %3140 = vmatprep.subr.bf16.mxu1 %v3470_v1 }
0x1082   : > { %3119 = vmatpush3.bf16.msra.mxu0 %v3471_v3  ;;  %3141 = vmatpush3.bf16.msra.mxu1 %v3472_v4 }
0x1083   : > { %3120 = vmatprep.subr.bf16.mxu0 %v3473_v5  ;;  %3142 = vmatprep.subr.bf16.mxu1 %v3474_v42 }
0x1086   : > { %3121 = vmatpush3.bf16.msra.mxu0 %v3475_v44  ;;  %3143 = vmatpush3.bf16.msra.mxu1 %v3476_v6 }
0x1087   : > { %3122 = vmatprep.subr.bf16.mxu0 %v3477_v7  ;;  %3144 = vmatprep.subr.bf16.mxu1 %v3478_v8 }
0x108a   : > { %3123 = vmatpush3.bf16.msra.mxu0 %v3479_v9  ;;  %3145 = vmatpush3.bf16.msra.mxu1 %v3480_v15 }
0x108b   : > { %3124 = vmatprep.subr.bf16.mxu0 %v3481_v54  ;;  %3146 = vmatprep.subr.bf16.mxu1 %v3482_v18 }
0x108e   : > { %3125 = vmatpush3.bf16.msra.mxu0 %v3483_v27  ;;  %3147 = vmatpush3.bf16.msra.mxu1 %v3484_v57 }
0x108f   : > { %3126 = vmatprep.subr.bf16.mxu0 %v3485_v10  ;;  %3148 = vmatprep.subr.bf16.mxu1 %v3486_v12 }
0x1092   : > { %3127 = vmatpush3.bf16.msra.mxu0 %v3487_v31  ;;  %3149 = vmatpush3.bf16.msra.mxu1 %v3488_v13 }
0x1148   : > { %v2389_v19 = vpop.f32.mrb[44].mxu0  ;;  %v2432_v20 = vpop.f32.mrb[44].mxu1 }
0x1149   : > { %v4341_v21 = vadd.f32 %v2389_v19, %v2178_v16  ;;  %v4343_v22 = vadd.f32 %v2432_v20, %v2186_v17  ;;  %v2391_v24 = vpop.f32.mrb[45].mxu0  ;;  %v2434_v28 = vpop.f32.mrb[45].mxu1 }
0x114a   : > { %v4345_v29 = vadd.f32 %v2391_v24, %v2182_v25  ;;  %v4347_v30 = vadd.f32 %v2434_v28, %v2190_v23  ;;  %v2393_v2 = vpop.f32.mrb[46].mxu0  ;;  %v2436_v32 = vpop.f32.mrb[46].mxu1 }
0x114b   : > { %v2449_v0 = vmul.f32 0.044715, %v4341_v21  ;;  %v2451_v61 = vmul.f32 0.044715, %v4343_v22  ;;  %v2394_v62 = vadd.f32 %v2393_v2, %v2178_v16  ;;  %v2437_v33 = vadd.f32 %v2436_v32, %v2186_v17  ;;  %v2395_v34 = vpop.f32.mrb[47].mxu0  ;;  %v2438_v35 = vpop.f32.mrb[47].mxu1 }
0x114c   : > { %v2450_v36 = vmul.f32 0.044715, %v4345_v29  ;;  %v2452_v11 = vmul.f32 0.044715, %v4347_v30  ;;  %v4353_v38 = vadd.f32 %v2395_v34, %v2182_v25  ;;  %v4355_v39 = vadd.f32 %v2438_v35, %v2190_v23 }
0x114d   : > { %v2457_v40 = vmul.f32 %v2449_v0, %v4341_v21  ;;  %v2459_v41 = vmul.f32 %v2451_v61, %v4343_v22  ;;  %v2453_v45 = vmul.f32 0.044715, %v2394_v62  ;;  %v2455_v46 = vmul.f32 0.044715, %v2437_v33 }
0x114e   : > { %v2458_v47 = vmul.f32 %v2450_v36, %v4345_v29  ;;  %v2460_v37 = vmul.f32 %v2452_v11, %v4347_v30  ;;  %v2454_v49 = vmul.f32 0.044715, %v4353_v38  ;;  %v2456_v50 = vmul.f32 0.044715, %v4355_v39 }
0x114f   : > { %v2465_v51 = vmul.f32 %v2457_v40, %v4341_v21  ;;  %v2467_v52 = vmul.f32 %v2459_v41, %v4343_v22  ;;  %v2461_v53 = vmul.f32 %v2453_v45, %v2394_v62  ;;  %v2463_v55 = vmul.f32 %v2455_v46, %v2437_v33 }
0x1150   : > { %v2466_v56 = vmul.f32 %v2458_v47, %v4345_v29  ;;  %v2468_v58 = vmul.f32 %v2460_v37, %v4347_v30  ;;  %v2462_v59 = vmul.f32 %v2454_v49, %v4353_v38  ;;  %v2464_v60 = vmul.f32 %v2456_v50, %v4355_v39 }
0x1151   : > { %v2473_v63 = vadd.f32 %v2465_v51, %v4341_v21  ;;  %v2475_v1 = vadd.f32 %v2467_v52, %v4343_v22  ;;  %v2469_v3 = vmul.f32 %v2461_v53, %v2394_v62  ;;  %v2471_v4 = vmul.f32 %v2463_v55, %v2437_v33 }
0x1152   : > { %v2470_v5 = vmul.f32 %v2462_v59, %v4353_v38  ;;  %v2472_v42 = vmul.f32 %v2464_v60, %v4355_v39  ;;  %v2474_v9 = vadd.f32 %v2466_v56, %v4345_v29  ;;  %v2476_v27 = vadd.f32 %v2468_v58, %v4347_v30 }
0x1153   : > { %v2481_v44 = vmul.f32 0.7978846, %v2473_v63  ;;  %v2483_v6 = vmul.f32 0.7978846, %v2475_v1  ;;  %v2477_v7 = vadd.f32 %v2469_v3, %v2394_v62  ;;  %v2479_v8 = vadd.f32 %v2471_v4, %v2437_v33 }
0x1154   : > { %v2478_v15 = vadd.f32 %v2470_v5, %v4353_v38  ;;  %v2482_v57 = vmul.f32 0.7978846, %v2474_v9  ;;  %v2480_v12 = vadd.f32 %v2472_v42, %v4355_v39  ;;  %v2484_v31 = vmul.f32 0.7978846, %v2476_v27 }
0x1155   : > { %3529 = vtanh.f32 %v2481_v44  ;;  %v2485_v54 = vmul.f32 0.7978846, %v2477_v7  ;;  %v2487_v18 = vmul.f32 0.7978846, %v2479_v8  ;;  %v2441_v19 = vmul.f32 0.5, %v4341_v21 }
0x1156   : > { %3531 = vtanh.f32 %v2483_v6  ;;  %v2486_v10 = vmul.f32 0.7978846, %v2478_v15  ;;  %v2488_v13 = vmul.f32 0.7978846, %v2480_v12  ;;  %v2445_v20 = vmul.f32 0.5, %v2394_v62 }
0x1157   : > { %3533 = vtanh.f32 %v2485_v54  ;;  %v2443_v2 = vmul.f32 0.5, %v4343_v22  ;;  %v2447_v32 = vmul.f32 0.5, %v2437_v33  ;;  %v2442_v34 = vmul.f32 0.5, %v4345_v29 }
0x1158   : > { %3535 = vtanh.f32 %v2487_v18  ;;  %v2446_v41 = vmul.f32 0.5, %v4353_v38  ;;  %v2444_v62 = vmul.f32 0.5, %v4347_v30  ;;  %v2448_v22 = vmul.f32 0.5, %v4355_v39  ;;  %v3019_v39 = vld [vmem:[%s730_s23] ss:$0 sm:$0xff] }
0x1159   : > { %3537 = vtanh.f32 %v2482_v57 }
0x115a   : > { %3539 = vtanh.f32 %v2486_v10 }
0x115b   : > { %3541 = vtanh.f32 %v2484_v31 }
0x115c   : > { %3543 = vtanh.f32 %v2488_v13 }
0x115f   : > { %v3530_v26 = vpop.eup %3529 }
0x1160   : > { %v3532_v14 = vpop.eup %3531  ;;  %v2497_v16 = vadd.f32 1.0, %v3530_v26 }
0x1161   : > { %v3534_v17 = vpop.eup %3533  ;;  %v2499_v25 = vadd.f32 1.0, %v3532_v14 }
0x1162   : > { %v3536_v23 = vpop.eup %3535  ;;  %v2501_v24 = vadd.f32 1.0, %v3534_v17  ;;  %v2505_v36 = vmul.f32 %v2497_v16, %v2441_v19 }
0x1163   : > { %v3538_v28 = vpop.eup %3537  ;;  %v2503_v0 = vadd.f32 1.0, %v3536_v23  ;;  %v2507_v46 = vmul.f32 %v2499_v25, %v2443_v2 }
0x1164   : > { %v3540_v61 = vpop.eup %3539  ;;  %v2498_v35 = vadd.f32 1.0, %v3538_v28  ;;  %v2509_v11 = vmul.f32 %v2501_v24, %v2445_v20 }
0x1165   : > { %v3542_v40 = vpop.eup %3541  ;;  %v2502_v45 = vadd.f32 1.0, %v3540_v61  ;;  %v2511_v47 = vmul.f32 %v2503_v0, %v2447_v32 }
0x1166   : > { %v3544_v21 = vpop.eup %3543  ;;  %v2500_v33 = vadd.f32 1.0, %v3542_v40  ;;  %v2513_v37 = vpack.c.bf16 %v2509_v11, %v2505_v36  ;;  %v2506_v49 = vmul.f32 %v2498_v35, %v2442_v34 }
0x1167   : > { %v2510_v50 = vmul.f32 %v2502_v45, %v2446_v41  ;;  %v2504_v29 = vadd.f32 1.0, %v3544_v21  ;;  %v2515_v51 = vpack.c.bf16 %v2511_v47, %v2507_v46 }
0x1168   : > { %v2508_v53 = vmul.f32 %v2500_v33, %v2444_v62 }
0x1169   : > { %v2514_v52 = vpack.c.bf16 %v2510_v50, %v2506_v49  ;;  %v2512_v55 = vmul.f32 %v2504_v29, %v2448_v22 }
0x116b   : > { %2745 = vmatprep.mubr.bf16.mxu0 %v2514_v52  ;;  %v2516_v38 = vpack.c.bf16 %v2512_v55, %v2508_v53 }
0x116c   : > { %2746 = vmatmul.mubr.bf16.vlgmr.msra.gmra.mrb[48].mxu0 %v2513_v37 }
0x116d   : > { %2786 = vmatprep.mubr.bf16.mxu1 %v2516_v38 }
0x116e   : > { %2787 = vmatmul.mubr.bf16.vlgmr.msra.gmra.mrb[48].mxu1 %v2515_v51 }
0x123f   : > { %v3128_v30 = vpop.f32.mrb[48].mxu0 }
0x1240   : > { %v3129_v56 = vpop.f32.mrb[49].mxu0 }
0x1241   : > { %v3150_v58 = vpop.f32.mrb[48].mxu1  ;;  %v3130_v59 = vadd.f32 %v3129_v56, %v3128_v30  ;;  %v3131_v60 = vpop.f32.mrb[50].mxu0 }
0x1242   : > { %v3151_v63 = vpop.f32.mrb[49].mxu1  ;;  %v3132_v1 = vpop.f32.mrb[51].mxu0 }
0x1243   : > { %v2748_v3 = vadd.f32 %v3130_v59, %v3019_v39  ;;  %v3152_v4 = vadd.f32 %v3151_v63, %v3150_v58  ;;  %v3153_v5 = vpop.f32.mrb[50].mxu1  ;;  %v3133_v42 = vadd.f32 %v3132_v1, %v3131_v60 }
0x1244   : > { %v3154_v44 = vpop.f32.mrb[51].mxu1 }
0x1245   : > { %v2789_v6 = vadd.f32 %v3152_v4, %v2748_v3  ;;  %v2751_v7 = vadd.f32 %v3133_v42, %v3019_v39  ;;  %v3155_v8 = vadd.f32 %v3154_v44, %v3153_v5  ;;  %2802 = sbr.rel (%p3052_p7) target bundleno = 4684 (0x124c), region = 92 }
0x1247   : > { %v2795_v9 = vadd.f32 %v2789_v6, %v4238_v43  ;;  %v2792_v15 = vadd.f32 %v3155_v8, %v2751_v7 }
0x1249   : > { %2797 = vst [vmem:[#allocation2] sm:$0xff] %v2795_v9  ;;  %v2796_v54 = vadd.f32 %v2792_v15, %v4240_v48  ;;  %2803 = vst [vmem:[%s4448_s24] sm:$0xff] (!%p3052_p7), %v2795_v9 }
0x124b   : > { %2798 = vst [vmem:[#allocation2 + $0x8] sm:$0xff] %v2796_v54  ;;  %2804 = vst [vmem:[%s4448_s24 + $0x8] sm:$0xff] (!%p3052_p7), %v2796_v54 }
0x124c PF: > { %s4449_s28 = sld [smem:[#allocation12_spill]]  ;;  %s4450_s12 = sld [smem:[#allocation11_spill]] }
0x124d   : > { %s4451_s27 = sld [smem:[#allocation13_spill]]  ;;  %s4452_s25 = smov %s3667_s26 }
0x1252   : > { %p26_p12 = scmp.ge.s32.totalorder %s4449_s28, 4   ;;  %s4453_s26 = smov %s4450_s12 }
0x1254   :  { %28 = sbr.rel (!%p26_p12) target bundleno = 10 (0xa), region = 151 }
0x125b   :  { %2816 = vsyncpa [#allocation5], 1 }
0x125c   :  { %2818 = vsyncpa [#allocation5 + $0x1], 1 }
0x125d   :  { %2819 = vsyncpa [#allocation7], 1 }
0x125e   :  { %2821 = vsyncpa [#allocation7 + $0x1], 1 }

</bundles_post_ra>
